<compile_context>
chip_gen: v7x
topology: tpu7x:2x2x1
jax: 0.10.0
libtpu: 0.0.40
codegen_flags: <defaults>
</compile_context>

<pallas_src>
import functools

import jax
import jax.numpy as jnp
from jax import lax
from jax.experimental import pallas as pl
from jax.experimental.pallas import tpu as pltpu

BN_EPS = 1e-5


def _pick_tile(c, target):
    """Largest lane-aligned (multiple of 128) tile <= target that divides c."""
    if c <= target:
        return c
    t = (target // 128) * 128
    while t >= 128:
        if c % t == 0:
            return t
        t -= 128
    return c  # no aligned divisor: fall back to the full dimension (no tiling)


def _fused_kernel(gate_ref, x_ref, x650_ref, w1_ref, gamma_ref, beta_ref,
                  w2_ref, out_ref, acc_ref, z_ref, *, n_cin):
    # gate_ref : (tcin, 1)    f32   SE gate tile (pre-sigmoid)
    # x_ref    : (tcin, HW)   f32   input activation tile
    # x650_ref : (Cmid, HW)   f32   residual (resident, fetched once)
    # w1_ref   : (Cmid, tcin) bf16  conv1 weight tile (PyTorch layout)
    # gamma/beta: (Cmid, 1)   f32   BN affine (resident)
    # w2_ref   : (tcout, Cmid) bf16 conv2 weight tile (PyTorch layout)
    # out_ref  : (tcout, HW)  f32
    # acc_ref  : (Cmid, HW)   f32   conv1 accumulator (scratch)
    # z_ref    : (Cmid, HW)   bf16  BN + residual result (scratch)
    t = pl.program_id(0)

    # ---- Phase 1: conv1 reduction over Cin tiles (gate * sigmoid fused in) ----
    @pl.when(t < n_cin)
    def _conv1():
        @pl.when(t == 0)
        def _init():
            acc_ref[...] = jnp.zeros_like(acc_ref)

        g = jax.nn.sigmoid(gate_ref[...])                      # (tcin, 1)  f32
        xg = (x_ref[...] * g).astype(jnp.bfloat16)             # (tcin, HW) bf16
        acc_ref[...] += jnp.dot(w1_ref[...], xg,
                                preferred_element_type=jnp.float32)

    # ---- Reduction finished: BatchNorm (batch stats, f32) + residual add ----
    @pl.when(t == n_cin - 1)
    def _bn_residual():
        y = acc_ref[...]                                       # (Cmid, HW) f32
        inv_m = 1.0 / y.shape[1]                               # N*H*W with N==1
        mean = jnp.sum(y, axis=1, keepdims=True) * inv_m       # (Cmid, 1)
        diff = y - mean
        var = jnp.sum(diff * diff, axis=1, keepdims=True) * inv_m
        scale = lax.rsqrt(var + BN_EPS) * gamma_ref[...]       # fused BN affine
        z = diff * scale + beta_ref[...] + x650_ref[...]       # (Cmid, HW)
        z_ref[...] = z.astype(jnp.bfloat16)

    # ---- Phase 2: conv2, one Cout tile per step (w2 streamed) ----
    @pl.when(t >= n_cin - 1)
    def _conv2():
        out_ref[...] = jnp.dot(w2_ref[...], z_ref[...],
                               preferred_element_type=jnp.float32
                               ).astype(out_ref.dtype)


@functools.partial(jax.jit, static_argnames=("cin_tile", "cout_tile"))
def fused_forward(x660, x656, x650, w1, gamma, beta, w2,
                  cin_tile=1152, cout_tile=1152):
    """PyTorch NCHW conventions in / out. Returns (N, Cout, H, W)."""
    N, Cin, H, W = x656.shape
    Cmid = w1.shape[0]
    Cout = w2.shape[0]
    if N != 1:
        # TODO(synk): for N > 1 the SE gate needs per-sample broadcast rows; the
        # channels-as-rows layout below assumes N == 1 (matches the module spec).
        raise NotImplementedError("fused_forward assumes batch size 1")
    HW = H * W

    # NCHW with N == 1 -> (C, H*W) matrices: pure reshapes, no transpose copies.
    x_cm = x656.reshape(Cin, HW)
    r_cm = x650.reshape(Cmid, HW)
    gate_cm = x660.reshape(Cin, 1)

    # Weights stay in PyTorch (out_ch, in_ch) layout (no transposes); bf16 cast
    # halves the dominant HBM traffic. (In a real model hoist the cast to
    # parameter-load time so it is done once, not per call.)
    w1_cm = w1.reshape(Cmid, Cin).astype(jnp.bfloat16)
    w2_cm = w2.reshape(Cout, Cmid).astype(jnp.bfloat16)
    gamma_cm = gamma.reshape(Cmid, 1).astype(jnp.float32)
    beta_cm = beta.reshape(Cmid, 1).astype(jnp.float32)

    tcin = _pick_tile(Cin, cin_tile)
    tcout = _pick_tile(Cout, cout_tile)
    n_cin = Cin // tcin
    n_cout = Cout // tcout
    last = n_cin - 1  # pin streamed cin blocks here during phase 2 (no re-fetch)

    out_cm = pl.pallas_call(
        functools.partial(_fused_kernel, n_cin=n_cin),
        out_shape=jax.ShapeDtypeStruct((Cout, HW), jnp.float32),
        grid=(n_cin + n_cout - 1,),
        in_specs=[
            pl.BlockSpec((tcin, 1), lambda t: (jnp.minimum(t, last), 0)),      # gate
            pl.BlockSpec((tcin, HW), lambda t: (jnp.minimum(t, last), 0)),     # x656
            pl.BlockSpec((Cmid, HW), lambda t: (0, 0)),                        # x650
            pl.BlockSpec((Cmid, tcin), lambda t: (0, jnp.minimum(t, last))),   # w1
            pl.BlockSpec((Cmid, 1), lambda t: (0, 0)),                         # gamma
            pl.BlockSpec((Cmid, 1), lambda t: (0, 0)),                         # beta
            pl.BlockSpec((tcout, Cmid), lambda t: (jnp.maximum(t - last, 0), 0)),  # w2
        ],
        out_specs=pl.BlockSpec((tcout, HW),
                               lambda t: (jnp.maximum(t - last, 0), 0)),
        scratch_shapes=[
            pltpu.VMEM((Cmid, HW), jnp.float32),    # conv1 f32 accumulator
            pltpu.VMEM((Cmid, HW), jnp.bfloat16),   # BN + residual result
        ],
        compiler_params=pltpu.CompilerParams(
            dimension_semantics=("arbitrary",),       # sequential: scratch carries
            vmem_limit_bytes=32 * 1024 * 1024,        # explicit for v5e (16 MiB default)
        ),
    )(gate_cm, x_cm, r_cm, w1_cm, gamma_cm, beta_cm, w2_cm)

    return out_cm.reshape(N, Cout, H, W)


def reference_forward(x660, x656, x650, w1, gamma, beta, w2):
    """Plain-JAX f32 reference matching the PyTorch module (training-mode BN)."""
    x = x656 * jax.nn.sigmoid(x660)                                   # (N,Cin,H,W)
    y = jnp.einsum('nchw,oc->nohw', x, w1.reshape(w1.shape[0], -1))   # conv 1x1
    mean = jnp.mean(y, axis=(0, 2, 3), keepdims=True)
    var = jnp.mean((y - mean) ** 2, axis=(0, 2, 3), keepdims=True)
    y_bn = (y - mean) / jnp.sqrt(var + BN_EPS)
    y_bn = y_bn * gamma.reshape(1, -1, 1, 1) + beta.reshape(1, -1, 1, 1)
    z = y_bn + x650
    return jnp.einsum('nchw,oc->nohw', z, w2.reshape(w2.shape[0], -1))
    # TODO(synk): training-mode BatchNorm also updates running_mean/running_var
    # buffers (momentum EMA); the kernel only does the forward normalization.


if __name__ == "__main__":
    # Small shapes consistent with the module's structure
    # (original: N=1, Cin=3456, Cmid=576, Cout=2304, H=W=7)
    N, Cin, Cmid, Cout, H, W = 1, 256, 128, 512, 7, 7

    key = jax.random.PRNGKey(0)
    k1, k2, k3, k4, k5, k6, k7 = jax.random.split(key, 7)

    x660 = jax.random.normal(k1, (N, Cin, 1, 1), dtype=jnp.float32)
    x656 = jax.random.normal(k2, (N, Cin, H, W), dtype=jnp.float32)
    x650 = jax.random.normal(k3, (N, Cmid, H, W), dtype=jnp.float32)

    w1 = jax.random.normal(k4, (Cmid, Cin, 1, 1), dtype=jnp.float32) * 0.02
    w2 = jax.random.normal(k5, (Cout, Cmid, 1, 1), dtype=jnp.float32) * 0.02
    gamma = 1.0 + 0.1 * jax.random.normal(k6, (Cmid,), dtype=jnp.float32)
    beta = 0.1 * jax.random.normal(k7, (Cmid,), dtype=jnp.float32)

    ref = reference_forward(x660, x656, x650, w1, gamma, beta, w2)

    # Default tiles (single grid step at these small shapes) ...
    out_a = jax.block_until_ready(
        fused_forward(x660, x656, x650, w1, gamma, beta, w2))
    # ... and small tiles to exercise the streamed / pipelined multi-step path.
    out_b = jax.block_until_ready(
        fused_forward(x660, x656, x650, w1, gamma, beta, w2,
                      cin_tile=128, cout_tile=256))

    for out in (out_a, out_b):
        assert out.shape == (N, Cout, H, W)
        # bf16 weights / activations in the matmuls (f32 accumulation & BN stats)
        assert jnp.allclose(out, ref, atol=2e-2, rtol=2e-2), "mismatch vs reference"

    print("KERNEL_OK")
</pallas_src>

<mosaic_0001>
module attributes {stable_mosaic.version = 11 : i64} {
  func.func @_fused_kernel(%arg0: i32, %arg1: memref<256x1xf32, #tpu.memory_space<vmem>>, %arg2: memref<256x49xf32, #tpu.memory_space<vmem>>, %arg3: memref<128x49xf32, #tpu.memory_space<vmem>>, %arg4: memref<128x256xbf16, #tpu.memory_space<vmem>>, %arg5: memref<128x1xf32, #tpu.memory_space<vmem>>, %arg6: memref<128x1xf32, #tpu.memory_space<vmem>>, %arg7: memref<512x128xbf16, #tpu.memory_space<vmem>>, %arg8: memref<512x49xf32, #tpu.memory_space<vmem>>, %arg9: memref<128x49xf32, #tpu.memory_space<vmem>>, %arg10: memref<128x49xbf16, #tpu.memory_space<vmem>>) attributes {dimension_semantics = [#tpu.dimension_semantics<arbitrary>], iteration_bounds = array<i64: 1>, scalar_prefetch = 0 : i64, scratch_operands = 2 : i64, tpu.core_type = #tpu.core_type<tc>, window_params = [{transform_indices = @transform_0, window_bounds = array<i64: 256, 1>}, {transform_indices = @transform_1, window_bounds = array<i64: 256, 49>}, {pipeline_mode = #tpu.pipeline_mode<synchronous>, transform_indices = @transform_2, window_bounds = array<i64: 128, 49>}, {transform_indices = @transform_3, window_bounds = array<i64: 128, 256>}, {pipeline_mode = #tpu.pipeline_mode<synchronous>, transform_indices = @transform_4, window_bounds = array<i64: 128, 1>}, {pipeline_mode = #tpu.pipeline_mode<synchronous>, transform_indices = @transform_5, window_bounds = array<i64: 128, 1>}, {transform_indices = @transform_6, window_bounds = array<i64: 512, 128>}, {transform_indices = @transform_7, window_bounds = array<i64: 512, 49>}]} {
    %c1_i32 = arith.constant 1 : i32
    %0 = arith.cmpi slt, %arg0, %c1_i32 : i32
    %1 = arith.extui %0 : i1 to i32
    %c0_i32 = arith.constant 0 : i32
    %2 = arith.cmpi ne, %1, %c0_i32 : i32
    scf.if %2 {
      %c0_i32_4 = arith.constant 0 : i32
      %9 = arith.cmpi eq, %arg0, %c0_i32_4 : i32
      %10 = arith.extui %9 : i1 to i32
      %c0_i32_5 = arith.constant 0 : i32
      %11 = arith.cmpi ne, %10, %c0_i32_5 : i32
      scf.if %11 {
        %cst_16 = arith.constant 0.000000e+00 : f32
        %27 = vector.broadcast %cst_16 : f32 to vector<128x49xf32>
        %c0_17 = arith.constant 0 : index
        %c0_18 = arith.constant 0 : index
        %28 = vector.load %arg9[%c0_17, %c0_18] : memref<128x49xf32, #tpu.memory_space<vmem>>, vector<128x49xf32>
        tpu.vector_store %arg9[%c0_17, %c0_18], %27 {strides = array<i32>} : memref<128x49xf32, #tpu.memory_space<vmem>>, vector<128x49xf32>,
      } else {
      }
      %c0 = arith.constant 0 : index
      %c0_6 = arith.constant 0 : index
      %12 = vector.load %arg1[%c0, %c0_6] : memref<256x1xf32, #tpu.memory_space<vmem>>, vector<256x1xf32>
      %13 = arith.negf %12 : vector<256x1xf32>
      %14 = math.exp %13 : vector<256x1xf32>
      %cst = arith.constant 1.000000e+00 : f32
      %15 = vector.broadcast %cst : f32 to vector<256x1xf32>
      %16 = arith.addf %15, %14 : vector<256x1xf32>
      %17 = arith.divf %15, %16 : vector<256x1xf32>
      %c0_7 = arith.constant 0 : index
      %c0_8 = arith.constant 0 : index
      %18 = vector.load %arg2[%c0_7, %c0_8] : memref<256x49xf32, #tpu.memory_space<vmem>>, vector<256x49xf32>
      %19 = vector.broadcast %17 : vector<256x1xf32> to vector<256x49xf32>
      %20 = arith.mulf %18, %19 : vector<256x49xf32>
      %21 = arith.truncf %20 : vector<256x49xf32> to vector<256x49xbf16>
      %c0_9 = arith.constant 0 : index
      %c0_10 = arith.constant 0 : index
      %22 = vector.load %arg9[%c0_9, %c0_10] : memref<128x49xf32, #tpu.memory_space<vmem>>, vector<128x49xf32>
      %c0_11 = arith.constant 0 : index
      %c0_12 = arith.constant 0 : index
      %23 = vector.load %arg4[%c0_11, %c0_12] : memref<128x256xbf16, #tpu.memory_space<vmem>>, vector<128x256xbf16>
      %cst_13 = arith.constant dense<0.000000e+00> : vector<128x49xf32>
      %24 = tpu.matmul %23, %21, %cst_13 {dimension_numbers = #tpu.dot_dimension_numbers<[1], [0], [0], [1], [0, 0, 1, 1], [], []>} : vector<128x256xbf16>, vector<256x49xbf16>, vector<128x49xf32> -> vector<128x49xf32>
      %25 = arith.addf %22, %24 : vector<128x49xf32>
      %c0_14 = arith.constant 0 : index
      %c0_15 = arith.constant 0 : index
      %26 = vector.load %arg9[%c0_14, %c0_15] : memref<128x49xf32, #tpu.memory_space<vmem>>, vector<128x49xf32>
      tpu.vector_store %arg9[%c0_14, %c0_15], %25 {strides = array<i32>} : memref<128x49xf32, #tpu.memory_space<vmem>>, vector<128x49xf32>,
    } else {
    }
    %c0_i32_0 = arith.constant 0 : i32
    %3 = arith.cmpi eq, %arg0, %c0_i32_0 : i32
    %4 = arith.extui %3 : i1 to i32
    %c0_i32_1 = arith.constant 0 : i32
    %5 = arith.cmpi ne, %4, %c0_i32_1 : i32
    scf.if %5 {
      %c0 = arith.constant 0 : index
      %c0_4 = arith.constant 0 : index
      %9 = vector.load %arg9[%c0, %c0_4] : memref<128x49xf32, #tpu.memory_space<vmem>>, vector<128x49xf32>
      %cst = arith.constant dense<0.000000e+00> : vector<128xf32>
      %10 = vector.multi_reduction <add>, %9, %cst [1] : vector<128x49xf32> to vector<128xf32>
      %11 = vector.shape_cast %10 : vector<128xf32> to vector<128x1xf32>
      %cst_5 = arith.constant 0.0204081628 : f32
      %12 = vector.broadcast %cst_5 : f32 to vector<128x1xf32>
      %13 = arith.mulf %11, %12 : vector<128x1xf32>
      %14 = vector.broadcast %13 : vector<128x1xf32> to vector<128x49xf32>
      %15 = arith.subf %9, %14 : vector<128x49xf32>
      %16 = arith.mulf %15, %15 : vector<128x49xf32>
      %cst_6 = arith.constant dense<0.000000e+00> : vector<128xf32>
      %17 = vector.multi_reduction <add>, %16, %cst_6 [1] : vector<128x49xf32> to vector<128xf32>
      %18 = vector.shape_cast %17 : vector<128xf32> to vector<128x1xf32>
      %cst_7 = arith.constant 0.0204081628 : f32
      %19 = vector.broadcast %cst_7 : f32 to vector<128x1xf32>
      %20 = arith.mulf %18, %19 : vector<128x1xf32>
      %cst_8 = arith.constant 9.99999974E-6 : f32
      %21 = vector.broadcast %cst_8 : f32 to vector<128x1xf32>
      %22 = arith.addf %20, %21 : vector<128x1xf32>
      %23 = math.rsqrt %22 : vector<128x1xf32>
      %c0_9 = arith.constant 0 : index
      %c0_10 = arith.constant 0 : index
      %24 = vector.load %arg5[%c0_9, %c0_10] : memref<128x1xf32, #tpu.memory_space<vmem>>, vector<128x1xf32>
      %25 = arith.mulf %23, %24 : vector<128x1xf32>
      %26 = vector.broadcast %25 : vector<128x1xf32> to vector<128x49xf32>
      %27 = arith.mulf %15, %26 : vector<128x49xf32>
      %c0_11 = arith.constant 0 : index
      %c0_12 = arith.constant 0 : index
      %28 = vector.load %arg6[%c0_11, %c0_12] : memref<128x1xf32, #tpu.memory_space<vmem>>, vector<128x1xf32>
      %29 = vector.broadcast %28 : vector<128x1xf32> to vector<128x49xf32>
      %30 = arith.addf %27, %29 : vector<128x49xf32>
      %c0_13 = arith.constant 0 : index
      %c0_14 = arith.constant 0 : index
      %31 = vector.load %arg3[%c0_13, %c0_14] : memref<128x49xf32, #tpu.memory_space<vmem>>, vector<128x49xf32>
      %32 = arith.addf %30, %31 : vector<128x49xf32>
      %33 = arith.truncf %32 : vector<128x49xf32> to vector<128x49xbf16>
      %c0_15 = arith.constant 0 : index
      %c0_16 = arith.constant 0 : index
      %34 = vector.load %arg10[%c0_15, %c0_16] : memref<128x49xbf16, #tpu.memory_space<vmem>>, vector<128x49xbf16>
      tpu.vector_store %arg10[%c0_15, %c0_16], %33 {strides = array<i32>} : memref<128x49xbf16, #tpu.memory_space<vmem>>, vector<128x49xbf16>,
    } else {
    }
    %c0_i32_2 = arith.constant 0 : i32
    %6 = arith.cmpi sge, %arg0, %c0_i32_2 : i32
    %7 = arith.extui %6 : i1 to i32
    %c0_i32_3 = arith.constant 0 : i32
    %8 = arith.cmpi ne, %7, %c0_i32_3 : i32
    scf.if %8 {
      %c0 = arith.constant 0 : index
      %c0_4 = arith.constant 0 : index
      %9 = vector.load %arg7[%c0, %c0_4] : memref<512x128xbf16, #tpu.memory_space<vmem>>, vector<512x128xbf16>
      %c0_5 = arith.constant 0 : index
      %c0_6 = arith.constant 0 : index
      %10 = vector.load %arg10[%c0_5, %c0_6] : memref<128x49xbf16, #tpu.memory_space<vmem>>, vector<128x49xbf16>
      %cst = arith.constant dense<0.000000e+00> : vector<512x49xf32>
      %11 = tpu.matmul %9, %10, %cst {dimension_numbers = #tpu.dot_dimension_numbers<[1], [0], [0], [1], [0, 0, 1, 1], [], []>} : vector<512x128xbf16>, vector<128x49xbf16>, vector<512x49xf32> -> vector<512x49xf32>
      %c0_7 = arith.constant 0 : index
      %c0_8 = arith.constant 0 : index
      %12 = vector.load %arg8[%c0_7, %c0_8] : memref<512x49xf32, #tpu.memory_space<vmem>>, vector<512x49xf32>
      tpu.vector_store %arg8[%c0_7, %c0_8], %11 {strides = array<i32>} : memref<512x49xf32, #tpu.memory_space<vmem>>, vector<512x49xf32>,
    } else {
    }
    return
  }
  func.func @transform_0(%arg0: i32) -> (i32, i32) {
    %c0_i32 = arith.constant 0 : i32
    %0 = arith.minsi %arg0, %c0_i32 : i32
    %c0_i32_0 = arith.constant 0 : i32
    %c0_i32_1 = arith.constant 0 : i32
    return %0, %c0_i32_0 : i32, i32
  }
  func.func @transform_1(%arg0: i32) -> (i32, i32) {
    %c0_i32 = arith.constant 0 : i32
    %0 = arith.minsi %arg0, %c0_i32 : i32
    %c0_i32_0 = arith.constant 0 : i32
    %c0_i32_1 = arith.constant 0 : i32
    return %0, %c0_i32_0 : i32, i32
  }
  func.func @transform_2(%arg0: i32) -> (i32, i32) {
    %c0_i32 = arith.constant 0 : i32
    %c0_i32_0 = arith.constant 0 : i32
    %c0_i32_1 = arith.constant 0 : i32
    return %c0_i32, %c0_i32_0 : i32, i32
  }
  func.func @transform_3(%arg0: i32) -> (i32, i32) {
    %c0_i32 = arith.constant 0 : i32
    %0 = arith.minsi %arg0, %c0_i32 : i32
    %c0_i32_0 = arith.constant 0 : i32
    %c0_i32_1 = arith.constant 0 : i32
    return %c0_i32_0, %0 : i32, i32
  }
  func.func @transform_4(%arg0: i32) -> (i32, i32) {
    %c0_i32 = arith.constant 0 : i32
    %c0_i32_0 = arith.constant 0 : i32
    %c0_i32_1 = arith.constant 0 : i32
    return %c0_i32, %c0_i32_0 : i32, i32
  }
  func.func @transform_5(%arg0: i32) -> (i32, i32) {
    %c0_i32 = arith.constant 0 : i32
    %c0_i32_0 = arith.constant 0 : i32
    %c0_i32_1 = arith.constant 0 : i32
    return %c0_i32, %c0_i32_0 : i32, i32
  }
  func.func @transform_6(%arg0: i32) -> (i32, i32) {
    %c0_i32 = arith.constant 0 : i32
    %0 = arith.subi %arg0, %c0_i32 : i32
    %c0_i32_0 = arith.constant 0 : i32
    %1 = arith.maxsi %0, %c0_i32_0 : i32
    %c0_i32_1 = arith.constant 0 : i32
    %c0_i32_2 = arith.constant 0 : i32
    return %1, %c0_i32_1 : i32, i32
  }
  func.func @transform_7(%arg0: i32) -> (i32, i32) {
    %c0_i32 = arith.constant 0 : i32
    %0 = arith.subi %arg0, %c0_i32 : i32
    %c0_i32_0 = arith.constant 0 : i32
    %1 = arith.maxsi %0, %c0_i32_0 : i32
    %c0_i32_1 = arith.constant 0 : i32
    %c0_i32_2 = arith.constant 0 : i32
    return %1, %c0_i32_1 : i32, i32
  }
}

</mosaic_0001>

<bundles_post_ra>
// kernel: fused_forward.1
= control target key start
LH: loop header
LB: loop body
LE: loop exit
PB: predicated region body
PF: predicated region fallthrough
CT: control target
= control target key end

     0   :  { %v2385_v0 = vmov 0   ;;  %vm35_vm0 = vcmask 400384   ;;  %s3397_s0 = inlined_call_operand.vmem [shape: f32[256,1], index: 0, kind: input, shape index: {}]   ;;  %s3398_s3 = inlined_call_operand.vmem [shape: bf16[128,256], index: 3, kind: input, shape index: {}]   ;;  %s3399_s1 = inlined_call_operand.vmem [shape: f32[256,49], index: 1, kind: input, shape index: {}]   ;;  %s3400_s5 = inlined_call_operand.vmem [shape: f32[128,1], index: 5, kind: input, shape index: {}]   ;;  %s3401_s4 = inlined_call_operand.vmem [shape: f32[128,1], index: 4, kind: input, shape index: {}]   ;;  %s3402_s6 = inlined_call_operand.vmem [shape: bf16[512,128], index: 6, kind: input, shape index: {}]   ;;  %s3403_s2 = inlined_call_operand.vmem [shape: f32[128,49], index: 2, kind: input, shape index: {}]   ;;  %s3404_s7 = inlined_call_operand.vmem [shape: f32[512,49], index: 7, kind: output, shape index: {}]  }
   0x1   :  { %2168 = vset.pattern.permute.xlu1 %v2385_v0  ;;  %2167 = vset.pattern.permute.xlu0 %v2385_v0  ;;  %v68_v1 = vld [vmem:[%s3397_s0 + $0x80] sm:$0xff]  ;;  %v69_v3 = vld [vmem:[%s3397_s0 + $0x88] sm:$0xff]  ;;  %v70_v8 = vld [vmem:[%s3397_s0 + $0x90] sm:$0xff] }
   0x2   :  { %v52_v2 = vld [vmem:[%s3397_s0] sm:$0xff]  ;;  %v1901_v4 = vmul.f32 -1.442695, %v68_v1  ;;  %v1902_v6 = vmul.f32 -1.442695, %v69_v3  ;;  %v53_v7 = vld [vmem:[%s3397_s0 + $0x8] sm:$0xff] }
   0x3   :  { %v1885_v5 = vmul.f32 -1.442695, %v52_v2  ;;  %v71_v9 = vld [vmem:[%s3397_s0 + $0x98] sm:$0xff]  ;;  %v1886_v10 = vmul.f32 -1.442695, %v53_v7  ;;  %v54_v13 = vld [vmem:[%s3397_s0 + $0x10] sm:$0xff] }
   0x4   :  { %2225 = vpow2.f32 %v1901_v4  ;;  %v1903_v11 = vmul.f32 -1.442695, %v70_v8  ;;  %v1904_v12 = vmul.f32 -1.442695, %v71_v9  ;;  %v55_v14 = vld [vmem:[%s3397_s0 + $0x18] sm:$0xff]  ;;  %v72_v15 = vld [vmem:[%s3397_s0 + $0xa0] sm:$0xff] }
   0x5   :  { %2227 = vpow2.f32 %v1885_v5  ;;  %v1887_v16 = vmul.f32 -1.442695, %v54_v13  ;;  %v1888_v17 = vmul.f32 -1.442695, %v55_v14  ;;  %v73_v18 = vld [vmem:[%s3397_s0 + $0xa8] sm:$0xff]  ;;  %v56_v19 = vld [vmem:[%s3397_s0 + $0x20] sm:$0xff] }
   0x6   :  { %2229 = vpow2.f32 %v1902_v6  ;;  %v1905_v20 = vmul.f32 -1.442695, %v72_v15  ;;  %v57_v21 = vld [vmem:[%s3397_s0 + $0x28] sm:$0xff]  ;;  %v1906_v22 = vmul.f32 -1.442695, %v73_v18  ;;  %v74_v23 = vld [vmem:[%s3397_s0 + $0xb0] sm:$0xff] }
   0x7   :  { %2231 = vpow2.f32 %v1886_v10  ;;  %v1889_v24 = vmul.f32 -1.442695, %v56_v19  ;;  %v1890_v25 = vmul.f32 -1.442695, %v57_v21  ;;  %v1907_v26 = vmul.f32 -1.442695, %v74_v23 }
   0x8   :  { %2233 = vpow2.f32 %v1903_v11  ;;  %v75_v46 = vld [vmem:[%s3397_s0 + $0xb8] sm:$0xff]  ;;  %v58_v49 = vld [vmem:[%s3397_s0 + $0x30] sm:$0xff]  ;;  %v76_v56 = vld [vmem:[%s3397_s0 + $0xc0] sm:$0xff] }
   0x9   :  { %2235 = vpow2.f32 %v1904_v12  ;;  %v59_v52 = vld [vmem:[%s3397_s0 + $0x38] sm:$0xff]  ;;  %v1908_v55 = vmul.f32 -1.442695, %v75_v46  ;;  %v1891_v59 = vmul.f32 -1.442695, %v58_v49  ;;  %v77_v60 = vld [vmem:[%s3397_s0 + $0xc8] sm:$0xff] }
   0xa   :  { %2237 = vpow2.f32 %v1887_v16  ;;  %v1892_v62 = vmul.f32 -1.442695, %v59_v52  ;;  %v60_v63 = vld [vmem:[%s3397_s0 + $0x40] sm:$0xff]  ;;  %v1909_v1 = vmul.f32 -1.442695, %v76_v56  ;;  %v61_v2 = vld [vmem:[%s3397_s0 + $0x48] sm:$0xff] }
   0xb   :  { %2239 = vpow2.f32 %v1888_v17  ;;  %v1910_v4 = vmul.f32 -1.442695, %v77_v60  ;;  %v78_v5 = vld [vmem:[%s3397_s0 + $0xd0] sm:$0xff]  ;;  %v1893_v7 = vmul.f32 -1.442695, %v60_v63  ;;  %v79_v8 = vld [vmem:[%s3397_s0 + $0xd8] sm:$0xff] }
   0xc   :  { %2241 = vpow2.f32 %v1905_v20  ;;  %v1894_v10 = vmul.f32 -1.442695, %v61_v2  ;;  %v62_v11 = vld [vmem:[%s3397_s0 + $0x50] sm:$0xff]  ;;  %v1911_v13 = vmul.f32 -1.442695, %v78_v5  ;;  %v63_v14 = vld [vmem:[%s3397_s0 + $0x58] sm:$0xff] }
   0xd   :  { %2243 = vpow2.f32 %v1906_v22  ;;  %v1912_v16 = vmul.f32 -1.442695, %v79_v8  ;;  %v1895_v18 = vmul.f32 -1.442695, %v62_v11  ;;  %v1896_v20 = vmul.f32 -1.442695, %v63_v14 }
   0xe   :  { %v2226_v27 = vpop.eup %2225  ;;  %2245 = vpow2.f32 %v1889_v24  ;;  %v80_v24 = vld [vmem:[%s3397_s0 + $0xe0] sm:$0xff]  ;;  %v82_v52 = vld [vmem:[%s3397_s0 + $0xf0] sm:$0xff]  ;;  %v67_v60 = vld [vmem:[%s3397_s0 + $0x78] sm:$0xff] }
   0xf   :  { %v2228_v28 = vpop.eup %2227  ;;  %v196_v29 = vadd.f32 1.0, %v2226_v27  ;;  %2247 = vpow2.f32 %v1890_v25  ;;  %v1900_v2 = vmul.f32 -1.442695, %v67_v60 }
  0x10   :  { %v2230_v30 = vpop.eup %2229  ;;  %v180_v31 = vadd.f32 1.0, %v2228_v28  ;;  %2249 = vpow2.f32 %v1907_v26  ;;  %v81_v28 = vld [vmem:[%s3397_s0 + $0xe8] sm:$0xff] }
  0x11   :  { %v2232_v32 = vpop.eup %2231  ;;  %2251 = vrcp.f32 %v196_v29  ;;  %v197_v33 = vadd.f32 1.0, %v2230_v30 }
  0x12   :  { %v2234_v34 = vpop.eup %2233  ;;  %2253 = vrcp.f32 %v180_v31  ;;  %v181_v35 = vadd.f32 1.0, %v2232_v32  ;;  %v1913_v31 = vmul.f32 -1.442695, %v80_v24 }
  0x13   :  { %v2236_v36 = vpop.eup %2235  ;;  %2255 = vrcp.f32 %v197_v33  ;;  %v198_v37 = vadd.f32 1.0, %v2234_v34 }
  0x14   :  { %v2238_v38 = vpop.eup %2237  ;;  %2257 = vrcp.f32 %v181_v35  ;;  %v199_v39 = vadd.f32 1.0, %v2236_v36  ;;  %v1914_v36 = vmul.f32 -1.442695, %v81_v28 }
  0x15   :  { %v2240_v40 = vpop.eup %2239  ;;  %2259 = vrcp.f32 %v198_v37  ;;  %v182_v41 = vadd.f32 1.0, %v2238_v38 }
  0x16   :  { %v2242_v42 = vpop.eup %2241  ;;  %2261 = vrcp.f32 %v199_v39  ;;  %v183_v43 = vadd.f32 1.0, %v2240_v40 }
  0x17   :  { %v2244_v44 = vpop.eup %2243  ;;  %2263 = vrcp.f32 %v182_v41  ;;  %v200_v45 = vadd.f32 1.0, %v2242_v42 }
  0x18   :  { %v2246_v47 = vpop.eup %2245  ;;  %2265 = vrcp.f32 %v183_v43  ;;  %v201_v48 = vadd.f32 1.0, %v2244_v44 }
  0x19   :  { %v2248_v50 = vpop.eup %2247  ;;  %2267 = vrcp.f32 %v200_v45  ;;  %v184_v51 = vadd.f32 1.0, %v2246_v47  ;;  %v64_v47 = vld [vmem:[%s3397_s0 + $0x60] sm:$0xff] }
  0x1a   :  { %v2250_v53 = vpop.eup %2249  ;;  %2269 = vrcp.f32 %v201_v48  ;;  %v185_v54 = vadd.f32 1.0, %v2248_v50  ;;  %v65_v50 = vld [vmem:[%s3397_s0 + $0x68] sm:$0xff] }
  0x1b   :  { %v2252_v57 = vpop.eup %2251  ;;  %2271 = vrcp.f32 %v184_v51  ;;  %v202_v58 = vadd.f32 1.0, %v2250_v53  ;;  %v1897_v53 = vmul.f32 -1.442695, %v64_v47  ;;  %v1898_v56 = vmul.f32 -1.442695, %v65_v50  ;;  %v295_v47 = vld [vmem:[%s3399_s1 + $0x98] sm:$0xff] }
  0x1c   :  { %v2254_v61 = vpop.eup %2253  ;;  %390 = vperm.xlu0 %2167, %v2252_v57   ;;  %2273 = vrcp.f32 %v185_v54  ;;  %v83_v54 = vld [vmem:[%s3397_s0 + $0xf8] sm:$0xff]  ;;  %v66_v57 = vld [vmem:[%s3397_s0 + $0x70] sm:$0xff] }
  0x1d   :  { %v2256_v0 = vpop.eup %2255  ;;  %310 = vperm.xlu1 %2168, %v2254_v61   ;;  %2275 = vrcp.f32 %v202_v58 }
  0x1e   :  { %v2258_v3 = vpop.eup %2257  ;;  %2277 = vpow2.f32 %v1908_v55 }
  0x1f   :  { %v2260_v6 = vpop.eup %2259  ;;  %2279 = vpow2.f32 %v1891_v59  ;;  %v1915_v59 = vmul.f32 -1.442695, %v82_v52 }
  0x20   :  { %v2262_v9 = vpop.eup %2261  ;;  %395 = vperm.xlu0 %2167, %v2256_v0   ;;  %2281 = vpow2.f32 %v1892_v62  ;;  %v1916_v62 = vmul.f32 -1.442695, %v83_v54  ;;  %v1899_v0 = vmul.f32 -1.442695, %v66_v57  ;;  %v278_v54 = vld [vmem:[%s3399_s1 + $0x10] sm:$0xff] }
  0x21   :  { %v2264_v12 = vpop.eup %2263  ;;  %315 = vperm.xlu1 %2168, %v2258_v3   ;;  %2283 = vpow2.f32 %v1909_v1 }
  0x22   :  { %v2266_v15 = vpop.eup %2265  ;;  %2285 = vpow2.f32 %v1910_v4 }
  0x23   :  { %v2268_v17 = vpop.eup %2267  ;;  %2287 = vpow2.f32 %v1893_v7 }
  0x24   :  { %v2270_v19 = vpop.eup %2269  ;;  %400 = vperm.xlu0 %2167, %v2260_v6   ;;  %2289 = vpow2.f32 %v1894_v10 }
  0x25   :  { %v2272_v21 = vpop.eup %2271  ;;  %405 = vperm.xlu1 %2168, %v2262_v9   ;;  %2291 = vpow2.f32 %v1911_v13 }
  0x26   :  { %v2274_v22 = vpop.eup %2273  ;;  %2293 = vpow2.f32 %v1912_v16 }
  0x27   :  { %v2276_v23 = vpop.eup %2275  ;;  %2295 = vpow2.f32 %v1895_v18 }
  0x28   :  { %v2278_v25 = vpop.eup %2277  ;;  %320 = vperm.xlu0 %2167, %v2264_v12   ;;  %2297 = vpow2.f32 %v1896_v20 }
  0x29   :  { %v2280_v26 = vpop.eup %2279  ;;  %325 = vperm.xlu1 %2168, %v2266_v15   ;;  %v203_v27 = vadd.f32 1.0, %v2278_v25 }
  0x2a   :  { %v2282_v29 = vpop.eup %2281  ;;  %v186_v30 = vadd.f32 1.0, %v2280_v26 }
  0x2b   :  { %v2284_v32 = vpop.eup %2283  ;;  %2299 = vrcp.f32 %v203_v27  ;;  %v187_v33 = vadd.f32 1.0, %v2282_v29 }
  0x2c   :  { %v2286_v34 = vpop.eup %2285  ;;  %410 = vperm.xlu0 %2167, %v2268_v17   ;;  %2301 = vrcp.f32 %v186_v30  ;;  %v204_v35 = vadd.f32 1.0, %v2284_v32 }
  0x2d   :  { %v2288_v37 = vpop.eup %2287  ;;  %415 = vperm.xlu1 %2168, %v2270_v19   ;;  %2303 = vrcp.f32 %v187_v33  ;;  %v205_v38 = vadd.f32 1.0, %v2286_v34  ;;  %v2171_v33 = vld [vmem:[%s3398_s3 + $0x4] ss:$8 sps:$4 sm:$0xff]  }
  0x2e   :  { %v2290_v39 = vpop.eup %2289  ;;  %v188_v40 = vadd.f32 1.0, %v2288_v37  ;;  %2305 = vpow2.f32 %v1913_v31  ;;  %660 = vmatprep.mubr.bf16.mxu0 %v2171_v33  ;;  %v293_v37 = vld [vmem:[%s3399_s1 + $0x88] sm:$0xff] }
  0x2f   :  { %v2292_v41 = vpop.eup %2291  ;;  %2307 = vrcp.f32 %v204_v35  ;;  %v189_v42 = vadd.f32 1.0, %v2290_v39  ;;  %v277_v39 = vld [vmem:[%s3399_s1 + $0x8] sm:$0xff] }
  0x30   :  { %v2294_v43 = vpop.eup %2293  ;;  %330 = vperm.xlu0 %2167, %v2272_v21   ;;  %v206_v44 = vadd.f32 1.0, %v2292_v41  ;;  %2309 = vpow2.f32 %v1914_v36  ;;  %v292_v36 = vld [vmem:[%s3399_s1 + $0x80] sm:$0xff] }
  0x31   :  { %v2296_v45 = vpop.eup %2295  ;;  %335 = vperm.xlu1 %2168, %v2274_v22   ;;  %2311 = vrcp.f32 %v205_v38  ;;  %v207_v46 = vadd.f32 1.0, %v2294_v43  ;;  %v276_v38 = vld [vmem:[%s3399_s1] sm:$0xff] }
  0x32   :  { %v2298_v48 = vpop.eup %2297  ;;  %2313 = vrcp.f32 %v188_v40  ;;  %v190_v49 = vadd.f32 1.0, %v2296_v45 }
  0x33   :  { %2315 = vrcp.f32 %v189_v42  ;;  %v191_v51 = vadd.f32 1.0, %v2298_v48 }
  0x34   :  { %420 = vperm.xlu0 %2167, %v2276_v23   ;;  %2317 = vrcp.f32 %v206_v44 }
  0x35   :  { %v2300_v55 = vpop.eup %2299  ;;  %2319 = vrcp.f32 %v207_v46  ;;  %v294_v46 = vld [vmem:[%s3399_s1 + $0x90] sm:$0xff] }
  0x36   :  { %v2302_v58 = vpop.eup %2301  ;;  %425 = vperm.xlu1 %2168, %v2300_v55   ;;  %2321 = vrcp.f32 %v190_v49  ;;  %v279_v55 = vld [vmem:[%s3399_s1 + $0x18] sm:$0xff] }
  0x37   :  { %v2304_v61 = vpop.eup %2303  ;;  %2323 = vrcp.f32 %v191_v51 }
  0x38   :  { %v2306_v63 = vpop.eup %2305  ;;  %340 = vperm.xlu0 %2167, %v2302_v58   ;;  %2325 = vpow2.f32 %v1897_v53 }
  0x39   :  { %v2308_v1 = vpop.eup %2307  ;;  %2327 = vpow2.f32 %v1898_v56  ;;  %v208_v5 = vadd.f32 1.0, %v2306_v63 }
  0x3a   :  { %v2310_v3 = vpop.eup %2309  ;;  %345 = vperm.xlu1 %2168, %v2304_v61   ;;  %2329 = vpow2.f32 %v1915_v59  ;;  %v296_v61 = vld [vmem:[%s3399_s1 + $0xa0] sm:$0xff] }
  0x3b   :  { %v2312_v4 = vpop.eup %2311  ;;  %2331 = vpow2.f32 %v1916_v62  ;;  %v209_v8 = vadd.f32 1.0, %v2310_v3  ;;  %v297_v62 = vld [vmem:[%s3399_s1 + $0xa8] sm:$0xff] }
  0x3c   :  { %v2314_v6 = vpop.eup %2313  ;;  %430 = vperm.xlu0 %2167, %v2308_v1   ;;  %2333 = vpow2.f32 %v1899_v0 }
  0x3d   :  { %v2316_v7 = vpop.eup %2315  ;;  %2335 = vpow2.f32 %v1900_v2 }
  0x3e   :  { %v2318_v9 = vpop.eup %2317  ;;  %435 = vperm.xlu1 %2168, %v2312_v4   ;;  %2337 = vrcp.f32 %v208_v5  ;;  %v280_v4 = vld [vmem:[%s3399_s1 + $0x20] sm:$0xff]  ;;  %v281_v5 = vld [vmem:[%s3399_s1 + $0x28] sm:$0xff] }
  0x3f   :  { %v2320_v10 = vpop.eup %2319  ;;  %2339 = vrcp.f32 %v209_v8 }
  0x40   :  { %v2322_v11 = vpop.eup %2321  ;;  %350 = vperm.xlu0 %2167, %v2314_v6  }
  0x41   :  { %v2324_v12 = vpop.eup %2323 }
  0x42   :  { %v2326_v13 = vpop.eup %2325  ;;  %355 = vperm.xlu1 %2168, %v2316_v7  }
  0x43   :  { %v2328_v14 = vpop.eup %2327  ;;  %v192_v15 = vadd.f32 1.0, %v2326_v13 }
  0x44   :  { %v2330_v16 = vpop.eup %2329  ;;  %440 = vperm.xlu0 %2167, %v2318_v9   ;;  %v193_v17 = vadd.f32 1.0, %v2328_v14  ;;  %v299_v14 = vld [vmem:[%s3399_s1 + $0xb8] sm:$0xff] }
  0x45   :  { %v2332_v18 = vpop.eup %2331  ;;  %2341 = vrcp.f32 %v192_v15  ;;  %v210_v19 = vadd.f32 1.0, %v2330_v16 }
  0x46   :  { %v2334_v20 = vpop.eup %2333  ;;  %445 = vperm.xlu1 %2168, %v2320_v10   ;;  %2343 = vrcp.f32 %v193_v17  ;;  %v211_v21 = vadd.f32 1.0, %v2332_v18  ;;  %v282_v17 = vld [vmem:[%s3399_s1 + $0x30] sm:$0xff] }
  0x47   :  { %v2336_v22 = vpop.eup %2335  ;;  %2345 = vrcp.f32 %v210_v19  ;;  %v194_v23 = vadd.f32 1.0, %v2334_v20  ;;  %v283_v20 = vld [vmem:[%s3399_s1 + $0x38] sm:$0xff] }
  0x48   :  { %360 = vperm.xlu0 %2167, %v2322_v11   ;;  %v2338_v24 = vpop.eup %2337  ;;  %2347 = vrcp.f32 %v211_v21  ;;  %v195_v25 = vadd.f32 1.0, %v2336_v22  ;;  %v298_v11 = vld [vmem:[%s3399_s1 + $0xb0] sm:$0xff] }
  0x49   :  { %v2340_v26 = vpop.eup %2339  ;;  %2349 = vrcp.f32 %v194_v23 }
  0x4a   :  { %365 = vperm.xlu1 %2168, %v2324_v12   ;;  %2351 = vrcp.f32 %v195_v25 }
  0x4c   :  { %450 = vperm.xlu0 %2167, %v2338_v24   ;;  %v300_v24 = vld [vmem:[%s3399_s1 + $0xc0] sm:$0xff] }
  0x4e   :  { %455 = vperm.xlu1 %2168, %v2340_v26  }
  0x4f   :  { %v2342_v27 = vpop.eup %2341 }
  0x50   :  { %v2344_v28 = vpop.eup %2343  ;;  %370 = vperm.xlu0 %2167, %v2342_v27   ;;  %v301_v27 = vld [vmem:[%s3399_s1 + $0xc8] sm:$0xff] }
  0x51   :  { %v2346_v29 = vpop.eup %2345 }
  0x52   :  { %375 = vperm.xlu1 %2168, %v2344_v28   ;;  %v2348_v30 = vpop.eup %2347 }
  0x53   :  { %v2350_v31 = vpop.eup %2349 }
  0x54   :  { %460 = vperm.xlu0 %2167, %v2346_v29   ;;  %v2352_v32 = vpop.eup %2351 }
  0x56   :  { %465 = vperm.xlu1 %2168, %v2348_v30  }
  0x58   :  { %380 = vperm.xlu0 %2167, %v2350_v31   ;;  %v284_v31 = vld [vmem:[%s3399_s1 + $0x40] sm:$0xff] }
  0x5a   :  { %385 = vperm.xlu1 %2168, %v2352_v32  }
  0x9b   :  { %v391_v34 = vpop.permute.xlu0 %390 }
  0x9c   :  { %v311_v35 = vpop.permute.xlu1 %310  ;;  %v484_v41 = vmul.f32 %v391_v34, %v292_v36  ;;  %v285_v34 = vld [vmem:[%s3399_s1 + $0x48] sm:$0xff] }
  0x9d   :  { %v468_v44 = vmul.f32 %v311_v35, %v276_v38  ;;  %v302_v38 = vld [vmem:[%s3399_s1 + $0xd0] sm:$0xff] }
  0x9f   :  { %v396_v40 = vpop.permute.xlu0 %395 }
  0xa0   :  { %v485_v42 = vmul.f32 %v396_v40, %v293_v37  ;;  %v316_v43 = vpop.permute.xlu1 %315 }
  0xa1   :  { %v469_v45 = vmul.f32 %v316_v43, %v277_v39 }
  0xa2   :  { %v508_v48 = vpack.c.bf16 %v485_v42, %v484_v41  ;;  %v303_v41 = vld [vmem:[%s3399_s1 + $0xd8] sm:$0xff] }
  0xa3   :  { %v401_v49 = vpop.permute.xlu0 %400  ;;  %v500_v50 = vpack.c.bf16 %v469_v45, %v468_v44  ;;  %v286_v45 = vld [vmem:[%s3399_s1 + $0x50] sm:$0xff] }
  0xa4   :  { %v486_v51 = vmul.f32 %v401_v49, %v294_v46  ;;  %v406_v52 = vpop.permute.xlu1 %405  ;;  %1965 = vmatprep.subr.bf16.mxu0 %v508_v48  ;;  %v287_v48 = vld [vmem:[%s3399_s1 + $0x58] sm:$0xff] }
  0xa5   :  { %v487_v53 = vmul.f32 %v406_v52, %v295_v47  ;;  %1966 = vmatpush3.bf16.msra.mxu0 %v500_v50  ;;  %v304_v52 = vld [vmem:[%s3399_s1 + $0xe0] sm:$0xff] }
  0xa7   :  { %v509_v56 = vpack.c.bf16 %v487_v53, %v486_v51  ;;  %v321_v57 = vpop.permute.xlu0 %320 }
  0xa8   :  { %v470_v58 = vmul.f32 %v321_v57, %v278_v54  ;;  %v326_v59 = vpop.permute.xlu1 %325 }
  0xa9   :  { %v471_v60 = vmul.f32 %v326_v59, %v279_v55  ;;  %1967 = vmatprep.subr.bf16.mxu0 %v509_v56  ;;  %v305_v55 = vld [vmem:[%s3399_s1 + $0xe8] sm:$0xff]  ;;  %v288_v59 = vld [vmem:[%s3399_s1 + $0x60] sm:$0xff] }
  0xab   :  { %v501_v63 = vpack.c.bf16 %v471_v60, %v470_v58  ;;  %v411_v0 = vpop.permute.xlu0 %410 }
  0xac   :  { %v488_v1 = vmul.f32 %v411_v0, %v296_v61  ;;  %v416_v2 = vpop.permute.xlu1 %415 }
  0xad   :  { %v489_v3 = vmul.f32 %v416_v2, %v297_v62  ;;  %1968 = vmatpush3.bf16.msra.mxu0 %v501_v63  ;;  %v289_v62 = vld [vmem:[%s3399_s1 + $0x68] sm:$0xff]  ;;  %v306_v2 = vld [vmem:[%s3399_s1 + $0xf0] sm:$0xff] }
  0xaf   :  { %v510_v6 = vpack.c.bf16 %v489_v3, %v488_v1  ;;  %v331_v7 = vpop.permute.xlu0 %330 }
  0xb0   :  { %v472_v8 = vmul.f32 %v331_v7, %v280_v4  ;;  %v336_v9 = vpop.permute.xlu1 %335 }
  0xb1   :  { %v473_v10 = vmul.f32 %v336_v9, %v281_v5  ;;  %1969 = vmatprep.subr.bf16.mxu0 %v510_v6  ;;  %v307_v5 = vld [vmem:[%s3399_s1 + $0xf8] sm:$0xff]  ;;  %v290_v9 = vld [vmem:[%s3399_s1 + $0x70] sm:$0xff] }
  0xb3   :  { %v502_v12 = vpack.c.bf16 %v473_v10, %v472_v8  ;;  %v421_v13 = vpop.permute.xlu0 %420 }
  0xb4   :  { %v490_v15 = vmul.f32 %v421_v13, %v298_v11 }
  0xb5   :  { %v426_v16 = vpop.permute.xlu1 %425  ;;  %1970 = vmatpush3.bf16.msra.mxu0 %v502_v12  ;;  %v291_v12 = vld [vmem:[%s3399_s1 + $0x78] sm:$0xff] }
  0xb6   :  { %v491_v18 = vmul.f32 %v426_v16, %v299_v14 }
  0xb7   :  { %v341_v19 = vpop.permute.xlu0 %340 }
  0xb8   :  { %v511_v21 = vpack.c.bf16 %v491_v18, %v490_v15  ;;  %v474_v22 = vmul.f32 %v341_v19, %v282_v17  ;;  %v2169_v18 = vld [vmem:[%s3398_s3] ss:$8 sps:$4 sm:$0xff]   ;;  %v2172_v19 = vld [vmem:[%s3398_s3 + $0x14] ss:$8 sps:$4 sm:$0xff]  }
  0xb9   :  { %v346_v23 = vpop.permute.xlu1 %345 }
  0xba   :  { %v475_v25 = vmul.f32 %v346_v23, %v283_v20  ;;  %1971 = vmatprep.subr.bf16.mxu0 %v511_v21  ;;  %v2174_v20 = vld [vmem:[%s3398_s3 + $0x10] ss:$8 sps:$4 sm:$0xff]   ;;  %v2175_v21 = vld [vmem:[%s3398_s3 + $0x24] ss:$8 sps:$4 sm:$0xff]   ;;  %v2178_v23 = vld [vmem:[%s3398_s3 + $0x34] ss:$8 sps:$4 sm:$0xff]  }
  0xbb   :  { %v431_v26 = vpop.permute.xlu0 %430 }
  0xbc   :  { %v503_v28 = vpack.c.bf16 %v475_v25, %v474_v22  ;;  %v492_v29 = vmul.f32 %v431_v26, %v300_v24  ;;  %v2177_v22 = vld [vmem:[%s3398_s3 + $0x20] ss:$8 sps:$4 sm:$0xff]   ;;  %v2180_v24 = vld [vmem:[%s3398_s3 + $0x30] ss:$8 sps:$4 sm:$0xff]   ;;  %v2181_v25 = vld [vmem:[%s3398_s3 + $0x44] ss:$8 sps:$4 sm:$0xff]  }
  0xbd   :  { %v436_v30 = vpop.permute.xlu1 %435  ;;  %v2183_v26 = vld [vmem:[%s3398_s3 + $0x40] ss:$8 sps:$4 sm:$0xff]  }
  0xbe   :  { %v493_v32 = vmul.f32 %v436_v30, %v301_v27  ;;  %1972 = vmatpush3.bf16.msra.mxu0 %v503_v28  ;;  %v2184_v27 = vld [vmem:[%s3398_s3 + $0x54] ss:$8 sps:$4 sm:$0xff]   ;;  %v2186_v28 = vld [vmem:[%s3398_s3 + $0x50] ss:$8 sps:$4 sm:$0xff]   ;;  %v2189_v30 = vld [vmem:[%s3398_s3 + $0x60] ss:$8 sps:$4 sm:$0xff]  }
  0xbf   :  { %v351_v33 = vpop.permute.xlu0 %350 }
  0xc0   :  { %v512_v35 = vpack.c.bf16 %v493_v32, %v492_v29  ;;  %v476_v36 = vmul.f32 %v351_v33, %v284_v31  ;;  %v2187_v29 = vld [vmem:[%s3398_s3 + $0x64] ss:$8 sps:$4 sm:$0xff]   ;;  %v2190_v31 = vld [vmem:[%s3398_s3 + $0x74] ss:$8 sps:$4 sm:$0xff]   ;;  %v2192_v32 = vld [vmem:[%s3398_s3 + $0x70] ss:$8 sps:$4 sm:$0xff]  }
  0xc1   :  { %v356_v37 = vpop.permute.xlu1 %355  ;;  %v2386_v33 = vmov 0.0  }
  0xc2   :  { %v477_v39 = vmul.f32 %v356_v37, %v285_v34  ;;  %1973 = vmatprep.subr.bf16.mxu0 %v512_v35  ;;  %36 = vst.msk [vmem:[#allocation2] sm:$0xff] %vm35_vm0, %v2386_v33  ;;  %37 = vst.msk [vmem:[#allocation2 + $0x8] sm:$0xff] %vm35_vm0, %v2386_v33 }
  0xc3   :  { %v441_v40 = vpop.permute.xlu0 %440  ;;  %38 = vst.msk [vmem:[#allocation2 + $0x10] sm:$0xff] %vm35_vm0, %v2386_v33  ;;  %39 = vst.msk [vmem:[#allocation2 + $0x18] sm:$0xff] %vm35_vm0, %v2386_v33 }
  0xc4   :  { %v504_v42 = vpack.c.bf16 %v477_v39, %v476_v36  ;;  %v494_v43 = vmul.f32 %v441_v40, %v302_v38  ;;  %40 = vst.msk [vmem:[#allocation2 + $0x20] sm:$0xff] %vm35_vm0, %v2386_v33  ;;  %41 = vst.msk [vmem:[#allocation2 + $0x28] sm:$0xff] %vm35_vm0, %v2386_v33 }
  0xc5   :  { %v446_v44 = vpop.permute.xlu1 %445  ;;  %42 = vst.msk [vmem:[#allocation2 + $0x30] sm:$0xff] %vm35_vm0, %v2386_v33  ;;  %43 = vst.msk [vmem:[#allocation2 + $0x38] sm:$0xff] %vm35_vm0, %v2386_v33 }
  0xc6   :  { %v495_v46 = vmul.f32 %v446_v44, %v303_v41  ;;  %1974 = vmatpush3.bf16.msra.mxu0 %v504_v42  ;;  %44 = vst.msk [vmem:[#allocation2 + $0x40] sm:$0xff] %vm35_vm0, %v2386_v33  ;;  %45 = vst.msk [vmem:[#allocation2 + $0x48] sm:$0xff] %vm35_vm0, %v2386_v33 }
  0xc7   :  { %v361_v47 = vpop.permute.xlu0 %360  ;;  %46 = vst.msk [vmem:[#allocation2 + $0x50] sm:$0xff] %vm35_vm0, %v2386_v33  ;;  %47 = vst.msk [vmem:[#allocation2 + $0x58] sm:$0xff] %vm35_vm0, %v2386_v33 }
  0xc8   :  { %v513_v49 = vpack.c.bf16 %v495_v46, %v494_v43  ;;  %v478_v50 = vmul.f32 %v361_v47, %v286_v45  ;;  %48 = vst.msk [vmem:[#allocation2 + $0x60] sm:$0xff] %vm35_vm0, %v2386_v33  ;;  %49 = vst.msk [vmem:[#allocation2 + $0x68] sm:$0xff] %vm35_vm0, %v2386_v33 }
  0xc9   :  { %v366_v51 = vpop.permute.xlu1 %365  ;;  %50 = vst.msk [vmem:[#allocation2 + $0x70] sm:$0xff] %vm35_vm0, %v2386_v33  ;;  %51 = vst.msk [vmem:[#allocation2 + $0x78] sm:$0xff] %vm35_vm0, %v2386_v33  ;;  %v516_v35 = vld [vmem:[#allocation2] sm:$0xff]  ;;  %v517_v39 = vld [vmem:[#allocation2 + $0x8] sm:$0xff] }
  0xca   :  { %v479_v53 = vmul.f32 %v366_v51, %v287_v48  ;;  %1975 = vmatprep.subr.bf16.mxu0 %v513_v49  ;;  %v518_v45 = vld [vmem:[#allocation2 + $0x10] sm:$0xff]  ;;  %v519_v49 = vld [vmem:[#allocation2 + $0x18] sm:$0xff] }
  0xcb   :  { %v451_v54 = vpop.permute.xlu0 %450 }
  0xcc   :  { %v505_v56 = vpack.c.bf16 %v479_v53, %v478_v50  ;;  %v496_v57 = vmul.f32 %v451_v54, %v304_v52 }
  0xcd   :  { %v456_v58 = vpop.permute.xlu1 %455 }
  0xce   :  { %v497_v60 = vmul.f32 %v456_v58, %v305_v55  ;;  %1976 = vmatpush3.bf16.msra.mxu0 %v505_v56 }
  0xcf   :  { %v371_v61 = vpop.permute.xlu0 %370 }
  0xd0   :  { %v514_v63 = vpack.c.bf16 %v497_v60, %v496_v57  ;;  %v480_v0 = vmul.f32 %v371_v61, %v288_v59  ;;  %v520_v59 = vld [vmem:[#allocation2 + $0x20] sm:$0xff] }
  0xd1   :  { %v376_v1 = vpop.permute.xlu1 %375 }
  0xd2   :  { %v481_v3 = vmul.f32 %v376_v1, %v289_v62  ;;  %1977 = vmatprep.subr.bf16.mxu0 %v514_v63  ;;  %v521_v63 = vld [vmem:[#allocation2 + $0x28] sm:$0xff] }
  0xd3   :  { %v461_v4 = vpop.permute.xlu0 %460 }
  0xd4   :  { %v506_v6 = vpack.c.bf16 %v481_v3, %v480_v0  ;;  %v498_v7 = vmul.f32 %v461_v4, %v306_v2 }
  0xd5   :  { %v466_v8 = vpop.permute.xlu1 %465 }
  0xd6   :  { %v499_v10 = vmul.f32 %v466_v8, %v307_v5  ;;  %1978 = vmatpush3.bf16.msra.mxu0 %v506_v6  ;;  %v522_v8 = vld [vmem:[#allocation2 + $0x30] sm:$0xff] }
  0xd7   :  { %v381_v11 = vpop.permute.xlu0 %380 }
  0xd8   :  { %v515_v13 = vpack.c.bf16 %v499_v10, %v498_v7  ;;  %v482_v14 = vmul.f32 %v381_v11, %v290_v9 }
  0xd9   :  { %v386_v15 = vpop.permute.xlu1 %385 }
  0xda   :  { %v483_v16 = vmul.f32 %v386_v15, %v291_v12  ;;  %1979 = vmatprep.subr.bf16.mxu0 %v515_v13  ;;  %v523_v13 = vld [vmem:[#allocation2 + $0x38] sm:$0xff] }
  0xdc   :  { %v507_v17 = vpack.c.bf16 %v483_v16, %v482_v14 }
  0xde   :  { %1980 = vmatpush3.bf16.msra.mxu0 %v507_v17 }
  0xe1   :  { %661 = vmatmul.mubr.bf16.vlgmr.msra.gmra.mrb[0].mxu0 %v2169_v18 }
  0xe2   :  { %668 = vmatprep.mubr.bf16.mxu0 %v2172_v19 }
  0xe9   :  { %669 = vmatmul.mubr.bf16.gmra.mrb[4].mxu0 %v2174_v20 }
  0xea   :  { %676 = vmatprep.mubr.bf16.mxu0 %v2175_v21 }
  0xf1   :  { %677 = vmatmul.mubr.bf16.gmra.mrb[8].mxu0 %v2177_v22 }
  0xf2   :  { %684 = vmatprep.mubr.bf16.mxu0 %v2178_v23  ;;  %v524_v23 = vld [vmem:[#allocation2 + $0x40] sm:$0xff] }
  0xf9   :  { %685 = vmatmul.mubr.bf16.gmra.mrb[12].mxu0 %v2180_v24 }
  0xfa   :  { %692 = vmatprep.mubr.bf16.mxu0 %v2181_v25 }
 0x101   :  { %693 = vmatmul.mubr.bf16.gmra.mrb[16].mxu0 %v2183_v26 }
 0x102   :  { %700 = vmatprep.mubr.bf16.mxu0 %v2184_v27  ;;  %v525_v27 = vld [vmem:[#allocation2 + $0x48] sm:$0xff] }
 0x109   :  { %701 = vmatmul.mubr.bf16.gmra.mrb[20].mxu0 %v2186_v28 }
 0x10a   :  { %708 = vmatprep.mubr.bf16.mxu0 %v2187_v29 }
 0x111   :  { %709 = vmatmul.mubr.bf16.gmra.mrb[24].mxu0 %v2189_v30 }
 0x112   :  { %716 = vmatprep.mubr.bf16.mxu0 %v2190_v31 }
 0x119   :  { %717 = vmatmul.mubr.bf16.gmra.mrb[28].mxu0 %v2192_v32 }
 0x1b4   :  { %v1981_v34 = vpop.f32.mrb[0].mxu0 }
 0x1b5   :  { %v1982_v36 = vpop.f32.mrb[1].mxu0 }
 0x1b6   :  { %v1983_v37 = vadd.f32 %v1982_v36, %v1981_v34  ;;  %v1984_v38 = vpop.f32.mrb[2].mxu0 }
 0x1b7   :  { %v1985_v40 = vpop.f32.mrb[3].mxu0 }
 0x1b8   :  { %v725_v41 = vadd.f32 %v1983_v37, %v516_v35  ;;  %v1986_v42 = vadd.f32 %v1985_v40, %v1984_v38  ;;  %v526_v37 = vld [vmem:[#allocation2 + $0x50] sm:$0xff] }
 0x1ba   :  { %742 = vst.msk [vmem:[#allocation2] sm:$0xff] %vm35_vm0, %v725_v41  ;;  %v726_v43 = vadd.f32 %v1986_v42, %v517_v39  ;;  %v527_v41 = vld [vmem:[#allocation2 + $0x58] sm:$0xff] }
 0x1bc   :  { %743 = vst.msk [vmem:[#allocation2 + $0x8] sm:$0xff] %vm35_vm0, %v726_v43  ;;  %v1987_v44 = vpop.f32.mrb[4].mxu0 }
 0x1bd   :  { %v1988_v46 = vpop.f32.mrb[5].mxu0 }
 0x1be   :  { %v1989_v47 = vadd.f32 %v1988_v46, %v1987_v44  ;;  %v1990_v48 = vpop.f32.mrb[6].mxu0 }
 0x1bf   :  { %v1991_v50 = vpop.f32.mrb[7].mxu0 }
 0x1c0   :  { %v727_v51 = vadd.f32 %v1989_v47, %v518_v45  ;;  %v1992_v52 = vadd.f32 %v1991_v50, %v1990_v48 }
 0x1c1   :  { %v2685_v53 = vld [vmem:[#allocation2] sm:$0xff] }
 0x1c2   :  { %744 = vst.msk [vmem:[#allocation2 + $0x10] sm:$0xff] %vm35_vm0, %v727_v51  ;;  %v728_v54 = vadd.f32 %v1992_v52, %v519_v49  ;;  %v779_v55 = vsel %vm35_vm0, %v2685_v53, 0.0  ;;  %v528_v51 = vld [vmem:[#allocation2 + $0x60] sm:$0xff] }
 0x1c3   :  { %780 = vadd.xlane.f32.xlu0 %v779_v55  ;;  %v2690_v56 = vld [vmem:[#allocation2 + $0x8] sm:$0xff] }
 0x1c4   :  { %745 = vst.msk [vmem:[#allocation2 + $0x18] sm:$0xff] %vm35_vm0, %v728_v54  ;;  %v1993_v57 = vpop.f32.mrb[8].mxu0  ;;  %v782_v58 = vsel %vm35_vm0, %v2690_v56, 0.0 }
 0x1c5   :  { %v1994_v60 = vpop.f32.mrb[9].mxu0  ;;  %783 = vadd.xlane.f32.xlu1 %v782_v58 }
 0x1c6   :  { %v1995_v61 = vadd.f32 %v1994_v60, %v1993_v57  ;;  %v1996_v62 = vpop.f32.mrb[10].mxu0  ;;  %v529_v57 = vld [vmem:[#allocation2 + $0x68] sm:$0xff] }
 0x1c7   :  { %v1997_v0 = vpop.f32.mrb[11].mxu0 }
 0x1c8   :  { %v729_v1 = vadd.f32 %v1995_v61, %v520_v59  ;;  %v1998_v2 = vadd.f32 %v1997_v0, %v1996_v62 }
 0x1c9   :  { %v2695_v3 = vld [vmem:[#allocation2 + $0x10] sm:$0xff] }
 0x1ca   :  { %746 = vst.msk [vmem:[#allocation2 + $0x20] sm:$0xff] %vm35_vm0, %v729_v1  ;;  %v730_v4 = vadd.f32 %v1998_v2, %v521_v63  ;;  %v785_v5 = vsel %vm35_vm0, %v2695_v3, 0.0 }
 0x1cb   :  { %786 = vadd.xlane.f32.xlu0 %v785_v5  ;;  %v2700_v6 = vld [vmem:[#allocation2 + $0x18] sm:$0xff] }
 0x1cc   :  { %747 = vst.msk [vmem:[#allocation2 + $0x28] sm:$0xff] %vm35_vm0, %v730_v4  ;;  %v1999_v7 = vpop.f32.mrb[12].mxu0  ;;  %v788_v12 = vsel %vm35_vm0, %v2700_v6, 0.0  ;;  %v530_v4 = vld [vmem:[#allocation2 + $0x70] sm:$0xff] }
 0x1cd   :  { %v2000_v9 = vpop.f32.mrb[13].mxu0 }
 0x1ce   :  { %v2001_v10 = vadd.f32 %v2000_v9, %v1999_v7  ;;  %v2002_v11 = vpop.f32.mrb[14].mxu0  ;;  %v531_v9 = vld [vmem:[#allocation2 + $0x78] sm:$0xff] }
 0x1cf   :  { %v2003_v14 = vpop.f32.mrb[15].mxu0  ;;  %789 = vadd.xlane.f32.xlu0 %v788_v12 }
 0x1d0   :  { %v731_v15 = vadd.f32 %v2001_v10, %v522_v8  ;;  %v2004_v16 = vadd.f32 %v2003_v14, %v2002_v11 }
 0x1d1   :  { %v2705_v17 = vld [vmem:[#allocation2 + $0x20] sm:$0xff] }
 0x1d2   :  { %748 = vst.msk [vmem:[#allocation2 + $0x30] sm:$0xff] %vm35_vm0, %v731_v15  ;;  %v732_v18 = vadd.f32 %v2004_v16, %v523_v13  ;;  %v791_v19 = vsel %vm35_vm0, %v2705_v17, 0.0 }
 0x1d3   :  { %792 = vadd.xlane.f32.xlu1 %v791_v19  ;;  %v2710_v20 = vld [vmem:[#allocation2 + $0x28] sm:$0xff] }
 0x1d4   :  { %749 = vst.msk [vmem:[#allocation2 + $0x38] sm:$0xff] %vm35_vm0, %v732_v18  ;;  %v2005_v21 = vpop.f32.mrb[16].mxu0  ;;  %v794_v22 = vsel %vm35_vm0, %v2710_v20, 0.0 }
 0x1d5   :  { %v2006_v24 = vpop.f32.mrb[17].mxu0  ;;  %795 = vadd.xlane.f32.xlu0 %v794_v22 }
 0x1d6   :  { %v2007_v25 = vadd.f32 %v2006_v24, %v2005_v21  ;;  %v2008_v26 = vpop.f32.mrb[18].mxu0 }
 0x1d7   :  { %v2009_v28 = vpop.f32.mrb[19].mxu0 }
 0x1d8   :  { %v733_v29 = vadd.f32 %v2007_v25, %v524_v23  ;;  %v2010_v30 = vadd.f32 %v2009_v28, %v2008_v26 }
 0x1d9   :  { %v2715_v31 = vld [vmem:[#allocation2 + $0x30] sm:$0xff] }
 0x1da   :  { %750 = vst.msk [vmem:[#allocation2 + $0x40] sm:$0xff] %vm35_vm0, %v733_v29  ;;  %v734_v32 = vadd.f32 %v2010_v30, %v525_v27  ;;  %v797_v33 = vsel %vm35_vm0, %v2715_v31, 0.0 }
 0x1db   :  { %798 = vadd.xlane.f32.xlu1 %v797_v33  ;;  %v2720_v34 = vld [vmem:[#allocation2 + $0x38] sm:$0xff] }
 0x1dc   :  { %751 = vst.msk [vmem:[#allocation2 + $0x48] sm:$0xff] %vm35_vm0, %v734_v32  ;;  %v2011_v35 = vpop.f32.mrb[20].mxu0  ;;  %v800_v36 = vsel %vm35_vm0, %v2720_v34, 0.0 }
 0x1dd   :  { %v2012_v38 = vpop.f32.mrb[21].mxu0  ;;  %801 = vadd.xlane.f32.xlu0 %v800_v36 }
 0x1de   :  { %v2013_v39 = vadd.f32 %v2012_v38, %v2011_v35  ;;  %v2014_v40 = vpop.f32.mrb[22].mxu0 }
 0x1df   :  { %v2015_v42 = vpop.f32.mrb[23].mxu0 }
 0x1e0   :  { %v735_v43 = vadd.f32 %v2013_v39, %v526_v37  ;;  %v2016_v44 = vadd.f32 %v2015_v42, %v2014_v40 }
 0x1e1   :  { %v2725_v45 = vld [vmem:[#allocation2 + $0x40] sm:$0xff] }
 0x1e2   :  { %752 = vst.msk [vmem:[#allocation2 + $0x50] sm:$0xff] %vm35_vm0, %v735_v43  ;;  %v736_v46 = vadd.f32 %v2016_v44, %v527_v41  ;;  %v803_v47 = vsel %vm35_vm0, %v2725_v45, 0.0 }
 0x1e3   :  { %804 = vadd.xlane.f32.xlu1 %v803_v47  ;;  %v2730_v48 = vld [vmem:[#allocation2 + $0x48] sm:$0xff] }
 0x1e4   :  { %753 = vst.msk [vmem:[#allocation2 + $0x58] sm:$0xff] %vm35_vm0, %v736_v46  ;;  %v2017_v49 = vpop.f32.mrb[24].mxu0  ;;  %v806_v50 = vsel %vm35_vm0, %v2730_v48, 0.0 }
 0x1e5   :  { %v2018_v52 = vpop.f32.mrb[25].mxu0  ;;  %807 = vadd.xlane.f32.xlu0 %v806_v50 }
 0x1e6   :  { %v2019_v54 = vadd.f32 %v2018_v52, %v2017_v49  ;;  %v2020_v55 = vpop.f32.mrb[26].mxu0 }
 0x1e7   :  { %v2021_v58 = vpop.f32.mrb[27].mxu0 }
 0x1e8   :  { %v737_v59 = vadd.f32 %v2019_v54, %v528_v51  ;;  %v2022_v60 = vadd.f32 %v2021_v58, %v2020_v55 }
 0x1e9   :  { %v2735_v61 = vld [vmem:[#allocation2 + $0x50] sm:$0xff] }
 0x1ea   :  { %754 = vst.msk [vmem:[#allocation2 + $0x60] sm:$0xff] %vm35_vm0, %v737_v59  ;;  %v738_v62 = vadd.f32 %v2022_v60, %v529_v57  ;;  %v809_v63 = vsel %vm35_vm0, %v2735_v61, 0.0 }
 0x1eb   :  { %810 = vadd.xlane.f32.xlu1 %v809_v63  ;;  %v2740_v0 = vld [vmem:[#allocation2 + $0x58] sm:$0xff] }
 0x1ec   :  { %755 = vst.msk [vmem:[#allocation2 + $0x68] sm:$0xff] %vm35_vm0, %v738_v62  ;;  %v2023_v1 = vpop.f32.mrb[28].mxu0  ;;  %v812_v2 = vsel %vm35_vm0, %v2740_v0, 0.0 }
 0x1ed   :  { %v2024_v5 = vpop.f32.mrb[29].mxu0  ;;  %813 = vadd.xlane.f32.xlu0 %v812_v2 }
 0x1ee   :  { %v2025_v7 = vadd.f32 %v2024_v5, %v2023_v1  ;;  %v2026_v8 = vpop.f32.mrb[30].mxu0 }
 0x1ef   :  { %v2027_v10 = vpop.f32.mrb[31].mxu0 }
 0x1f0   :  { %v739_v11 = vadd.f32 %v2025_v7, %v530_v4  ;;  %v2028_v12 = vadd.f32 %v2027_v10, %v2026_v8 }
 0x1f1   :  { %v2745_v13 = vld [vmem:[#allocation2 + $0x60] sm:$0xff] }
 0x1f2   :  { %756 = vst.msk [vmem:[#allocation2 + $0x70] sm:$0xff] %vm35_vm0, %v739_v11  ;;  %v740_v14 = vadd.f32 %v2028_v12, %v531_v9  ;;  %v815_v15 = vsel %vm35_vm0, %v2745_v13, 0.0 }
 0x1f3   :  { %816 = vadd.xlane.f32.xlu1 %v815_v15  ;;  %v2750_v16 = vld [vmem:[#allocation2 + $0x68] sm:$0xff] }
 0x1f4   :  { %757 = vst.msk [vmem:[#allocation2 + $0x78] sm:$0xff] %vm35_vm0, %v740_v14  ;;  %v818_v18 = vsel %vm35_vm0, %v2750_v16, 0.0 }
 0x1f5   :  { %819 = vadd.xlane.f32.xlu0 %v818_v18 }
 0x1f9   :  { %v2755_v19 = vld [vmem:[#allocation2 + $0x70] sm:$0xff] }
 0x1fa   :  { %v821_v21 = vsel %vm35_vm0, %v2755_v19, 0.0 }
 0x1fb   :  { %822 = vadd.xlane.f32.xlu1 %v821_v21  ;;  %v2759_v22 = vld [vmem:[#allocation2 + $0x78] sm:$0xff] }
 0x1fc   :  { %v824_v23 = vsel %vm35_vm0, %v2759_v22, 0.0 }
 0x1fd   :  { %825 = vadd.xlane.f32.xlu0 %v824_v23 }
 0x250   :  { %v781_v24 = vpop.xlane.xlu0 %780 }
 0x251   :  { %v827_v25 = vmul.f32 0.020408163, %v781_v24 }
 0x252   :  { %v784_v26 = vpop.xlane.xlu1 %783 }
 0x253   :  { %v2764_v27 = vsub.f32 %v2685_v53, %v827_v25  ;;  %v828_v28 = vmul.f32 0.020408163, %v784_v26 }
 0x255   :  { %v2767_v29 = vsub.f32 %v2690_v56, %v828_v28  ;;  %v859_v30 = vmul.f32 %v2764_v27, %v2764_v27 }
 0x257   :  { %v875_v32 = vsel %vm35_vm0, %v859_v30, 0.0  ;;  %v860_v33 = vmul.f32 %v2767_v29, %v2767_v29 }
 0x258   :  { %876 = vadd.xlane.f32.xlu1 %v875_v32  ;;  %v787_v35 = vpop.xlane.xlu0 %786 }
 0x259   :  { %v829_v36 = vmul.f32 0.020408163, %v787_v35  ;;  %v878_v37 = vsel %vm35_vm0, %v860_v33, 0.0 }
 0x25a   :  { %879 = vadd.xlane.f32.xlu0 %v878_v37 }
 0x25b   :  { %v2776_v53 = vsub.f32 %v2695_v3, %v829_v36 }
 0x25c   :  { %v790_v38 = vpop.xlane.xlu0 %789 }
 0x25d   :  { %v830_v56 = vmul.f32 0.020408163, %v790_v38  ;;  %v861_v39 = vmul.f32 %v2776_v53, %v2776_v53 }
 0x25f   :  { %v2781_v40 = vsub.f32 %v2700_v6, %v830_v56  ;;  %v881_v41 = vsel %vm35_vm0, %v861_v39, 0.0 }
 0x260   :  { %v793_v42 = vpop.xlane.xlu1 %792  ;;  %882 = vadd.xlane.f32.xlu1 %v881_v41 }
 0x261   :  { %v831_v43 = vmul.f32 0.020408163, %v793_v42  ;;  %v862_v44 = vmul.f32 %v2781_v40, %v2781_v40 }
 0x262   :  { %v796_v46 = vpop.xlane.xlu0 %795 }
 0x263   :  { %v2787_v3 = vsub.f32 %v2705_v17, %v831_v43  ;;  %v832_v47 = vmul.f32 0.020408163, %v796_v46  ;;  %v884_v49 = vsel %vm35_vm0, %v862_v44, 0.0 }
 0x264   :  { %885 = vadd.xlane.f32.xlu0 %v884_v49  ;;  %v1102_v49 = vld [vmem:[%s3400_s5 + $0x18] sm:$0xff] }
 0x265   :  { %v2791_v50 = vsub.f32 %v2710_v20, %v832_v47  ;;  %v863_v6 = vmul.f32 %v2787_v3, %v2787_v3  ;;  %v1101_v47 = vld [vmem:[%s3400_s5 + $0x10] sm:$0xff] }
 0x267   :  { %v887_v51 = vsel %vm35_vm0, %v863_v6, 0.0  ;;  %v864_v52 = vmul.f32 %v2791_v50, %v2791_v50  ;;  %v1103_v6 = vld [vmem:[%s3400_s5 + $0x20] sm:$0xff] }
 0x268   :  { %v799_v54 = vpop.xlane.xlu1 %798  ;;  %888 = vadd.xlane.f32.xlu1 %v887_v51  ;;  %v1104_v51 = vld [vmem:[%s3400_s5 + $0x28] sm:$0xff] }
 0x269   :  { %v833_v55 = vmul.f32 0.020408163, %v799_v54  ;;  %v890_v17 = vsel %vm35_vm0, %v864_v52, 0.0  ;;  %v1105_v52 = vld [vmem:[%s3400_s5 + $0x30] sm:$0xff]  ;;  %v1106_v54 = vld [vmem:[%s3400_s5 + $0x38] sm:$0xff] }
 0x26a   :  { %891 = vadd.xlane.f32.xlu0 %v890_v17  ;;  %v802_v57 = vpop.xlane.xlu0 %801  ;;  %v1108_v17 = vld [vmem:[%s3400_s5 + $0x48] sm:$0xff] }
 0x26b   :  { %v2800_v58 = vsub.f32 %v2715_v31, %v833_v55  ;;  %v834_v20 = vmul.f32 0.020408163, %v802_v57  ;;  %v1107_v55 = vld [vmem:[%s3400_s5 + $0x40] sm:$0xff]  ;;  %v1109_v57 = vld [vmem:[%s3400_s5 + $0x50] sm:$0xff] }
 0x26d   :  { %v2803_v59 = vsub.f32 %v2720_v34, %v834_v20  ;;  %v865_v60 = vmul.f32 %v2800_v58, %v2800_v58  ;;  %v1110_v20 = vld [vmem:[%s3400_s5 + $0x58] sm:$0xff] }
 0x26f   :  { %v893_v62 = vsel %vm35_vm0, %v865_v60, 0.0  ;;  %v866_v63 = vmul.f32 %v2803_v59, %v2803_v59  ;;  %v1111_v60 = vld [vmem:[%s3400_s5 + $0x60] sm:$0xff] }
 0x270   :  { %v805_v1 = vpop.xlane.xlu1 %804  ;;  %894 = vadd.xlane.f32.xlu1 %v893_v62  ;;  %v1112_v62 = vld [vmem:[%s3400_s5 + $0x68] sm:$0xff] }
 0x271   :  { %v835_v2 = vmul.f32 0.020408163, %v805_v1  ;;  %v896_v4 = vsel %vm35_vm0, %v866_v63, 0.0 }
 0x272   :  { %897 = vadd.xlane.f32.xlu0 %v896_v4  ;;  %v808_v31 = vpop.xlane.xlu0 %807 }
 0x273   :  { %v2812_v5 = vsub.f32 %v2725_v45, %v835_v2  ;;  %v836_v34 = vmul.f32 0.020408163, %v808_v31 }
 0x275   :  { %v2815_v7 = vsub.f32 %v2730_v48, %v836_v34  ;;  %v867_v8 = vmul.f32 %v2812_v5, %v2812_v5 }
 0x277   :  { %v899_v9 = vsel %vm35_vm0, %v867_v8, 0.0  ;;  %v868_v10 = vmul.f32 %v2815_v7, %v2815_v7 }
 0x278   :  { %v811_v11 = vpop.xlane.xlu1 %810  ;;  %900 = vadd.xlane.f32.xlu1 %v899_v9 }
 0x279   :  { %v837_v12 = vmul.f32 0.020408163, %v811_v11  ;;  %v902_v14 = vsel %vm35_vm0, %v868_v10, 0.0 }
 0x27a   :  { %903 = vadd.xlane.f32.xlu0 %v902_v14  ;;  %v814_v45 = vpop.xlane.xlu0 %813  ;;  %v971_v14 = vld [vmem:[%s3401_s4] sm:$0xff] }
 0x27b   :  { %v2824_v15 = vsub.f32 %v2735_v61, %v837_v12  ;;  %v838_v48 = vmul.f32 0.020408163, %v814_v45 }
 0x27d   :  { %v2827_v18 = vsub.f32 %v2740_v0, %v838_v48  ;;  %v869_v21 = vmul.f32 %v2824_v15, %v2824_v15 }
 0x27f   :  { %v905_v23 = vsel %vm35_vm0, %v869_v21, 0.0  ;;  %v870_v24 = vmul.f32 %v2827_v18, %v2827_v18  ;;  %v972_v21 = vld [vmem:[%s3401_s4 + $0x8] sm:$0xff] }
 0x280   :  { %v817_v25 = vpop.xlane.xlu1 %816  ;;  %906 = vadd.xlane.f32.xlu1 %v905_v23 }
 0x281   :  { %v839_v26 = vmul.f32 0.020408163, %v817_v25  ;;  %v908_v28 = vsel %vm35_vm0, %v870_v24, 0.0 }
 0x282   :  { %909 = vadd.xlane.f32.xlu0 %v908_v28  ;;  %v820_v61 = vpop.xlane.xlu0 %819 }
 0x283   :  { %v2836_v30 = vsub.f32 %v2745_v13, %v839_v26  ;;  %v840_v0 = vmul.f32 0.020408163, %v820_v61 }
 0x285   :  { %v2839_v32 = vsub.f32 %v2750_v16, %v840_v0  ;;  %v871_v33 = vmul.f32 %v2836_v30, %v2836_v30 }
 0x287   :  { %v911_v35 = vsel %vm35_vm0, %v871_v33, 0.0  ;;  %v872_v36 = vmul.f32 %v2839_v32, %v2839_v32 }
 0x288   :  { %v823_v37 = vpop.xlane.xlu1 %822  ;;  %912 = vadd.xlane.f32.xlu1 %v911_v35 }
 0x289   :  { %v841_v38 = vmul.f32 0.020408163, %v823_v37  ;;  %v914_v56 = vsel %vm35_vm0, %v872_v36, 0.0  ;;  %v973_v36 = vld [vmem:[%s3401_s4 + $0x10] sm:$0xff] }
 0x28a   :  { %915 = vadd.xlane.f32.xlu0 %v914_v56  ;;  %v826_v13 = vpop.xlane.xlu0 %825 }
 0x28b   :  { %v2848_v39 = vsub.f32 %v2755_v19, %v841_v38  ;;  %v842_v16 = vmul.f32 0.020408163, %v826_v13  ;;  %v1099_v19 = vld [vmem:[%s3400_s5] sm:$0xff] }
 0x28d   :  { %v2851_v41 = vsub.f32 %v2759_v22, %v842_v16  ;;  %v873_v42 = vmul.f32 %v2848_v39, %v2848_v39  ;;  %v1100_v22 = vld [vmem:[%s3400_s5 + $0x8] sm:$0xff]  ;;  %v974_v16 = vld [vmem:[%s3401_s4 + $0x18] sm:$0xff] }
 0x28f   :  { %v917_v43 = vsel %vm35_vm0, %v873_v42, 0.0  ;;  %v874_v44 = vmul.f32 %v2851_v41, %v2851_v41 }
 0x290   :  { %918 = vadd.xlane.f32.xlu1 %v917_v43 }
 0x291   :  { %v920_v46 = vsel %vm35_vm0, %v874_v44, 0.0 }
 0x292   :  { %921 = vadd.xlane.f32.xlu0 %v920_v46 }
 0x2a1   :  { %1117 = vperm.xlu1 %2168, %v1099_v19  }
 0x2a5   :  { %1122 = vperm.xlu1 %2168, %v1100_v22  }
 0x2a8   :  { %1127 = vperm.xlu0 %2167, %v1101_v47   ;;  %v975_v47 = vld [vmem:[%s3401_s4 + $0x20] sm:$0xff] }
 0x2a9   :  { %1132 = vperm.xlu1 %2168, %v1102_v49  }
 0x2ac   :  { %1137 = vperm.xlu0 %2167, %v1103_v6   ;;  %v976_v6 = vld [vmem:[%s3401_s4 + $0x28] sm:$0xff] }
 0x2ad   :  { %1142 = vperm.xlu1 %2168, %v1104_v51  }
 0x2b0   :  { %1147 = vperm.xlu0 %2167, %v1105_v52  }
 0x2b1   :  { %1152 = vperm.xlu1 %2168, %v1106_v54  }
 0x2b4   :  { %1157 = vperm.xlu0 %2167, %v1107_v55  }
 0x2b5   :  { %1162 = vperm.xlu1 %2168, %v1108_v17  }
 0x2b8   :  { %1167 = vperm.xlu0 %2167, %v1109_v57  }
 0x2b9   :  { %1172 = vperm.xlu1 %2168, %v1110_v20  }
 0x2bc   :  { %1177 = vperm.xlu0 %2167, %v1111_v60  }
 0x2bd   :  { %1182 = vperm.xlu1 %2168, %v1112_v62  }
 0x2e5   :  { %v877_v63 = vpop.xlane.xlu1 %876 }
 0x2e6   :  { %v923_v1 = vmul.f32 0.020408163, %v877_v63  ;;  %v977_v63 = vld [vmem:[%s3401_s4 + $0x30] sm:$0xff] }
 0x2e7   :  { %v880_v2 = vpop.xlane.xlu0 %879 }
 0x2e8   :  { %v939_v4 = vadd.f32 1e-05, %v923_v1  ;;  %v924_v31 = vmul.f32 0.020408163, %v880_v2  ;;  %v978_v2 = vld [vmem:[%s3401_s4 + $0x38] sm:$0xff] }
 0x2ea   :  { %2353 = vrsqrt.f32 %v939_v4  ;;  %v940_v34 = vadd.f32 1e-05, %v924_v31 }
 0x2ec   :  { %2355 = vrsqrt.f32 %v940_v34 }
 0x2ed   :  { %v883_v8 = vpop.xlane.xlu1 %882 }
 0x2ee   :  { %v925_v9 = vmul.f32 0.020408163, %v883_v8 }
 0x2f0   :  { %v941_v10 = vadd.f32 1e-05, %v925_v9 }
 0x2f1   :  { %v886_v11 = vpop.xlane.xlu0 %885 }
 0x2f2   :  { %2357 = vrsqrt.f32 %v941_v10  ;;  %v926_v12 = vmul.f32 0.020408163, %v886_v11 }
 0x2f4   :  { %v2354_v45 = vpop.eup %2353  ;;  %v942_v48 = vadd.f32 1e-05, %v926_v12 }
 0x2f5   :  { %v889_v23 = vpop.xlane.xlu1 %888  ;;  %v987_v24 = vmul.f32 %v2354_v45, %v971_v14  ;;  %v979_v45 = vld [vmem:[%s3401_s4 + $0x40] sm:$0xff] }
 0x2f6   :  { %v2356_v25 = vpop.eup %2355  ;;  %2359 = vrsqrt.f32 %v942_v48  ;;  %v927_v26 = vmul.f32 0.020408163, %v889_v23 }
 0x2f7   :  { %1005 = vperm.xlu1 %2168, %v987_v24   ;;  %v892_v28 = vpop.xlane.xlu0 %891  ;;  %v988_v61 = vmul.f32 %v2356_v25, %v972_v21  ;;  %v980_v21 = vld [vmem:[%s3401_s4 + $0x48] sm:$0xff] }
 0x2f8   :  { %v943_v0 = vadd.f32 1e-05, %v927_v26  ;;  %v928_v33 = vmul.f32 0.020408163, %v892_v28 }
 0x2f9   :  { %1010 = vperm.xlu0 %2167, %v988_v61  }
 0x2fa   :  { %2361 = vrsqrt.f32 %v943_v0  ;;  %v944_v35 = vadd.f32 1e-05, %v928_v33 }
 0x2fc   :  { %v2358_v37 = vpop.eup %2357  ;;  %2363 = vrsqrt.f32 %v944_v35 }
 0x2fd   :  { %v895_v38 = vpop.xlane.xlu1 %894  ;;  %v989_v56 = vmul.f32 %v2358_v37, %v973_v36  ;;  %v981_v36 = vld [vmem:[%s3401_s4 + $0x50] sm:$0xff] }
 0x2fe   :  { %v929_v13 = vmul.f32 0.020408163, %v895_v38  ;;  %v982_v38 = vld [vmem:[%s3401_s4 + $0x58] sm:$0xff] }
 0x2ff   :  { %1015 = vperm.xlu0 %2167, %v989_v56   ;;  %v898_v42 = vpop.xlane.xlu0 %897 }
 0x300   :  { %v2360_v43 = vpop.eup %2359  ;;  %v945_v44 = vadd.f32 1e-05, %v929_v13  ;;  %v930_v46 = vmul.f32 0.020408163, %v898_v42 }
 0x301   :  { %v990_v19 = vmul.f32 %v2360_v43, %v974_v16 }
 0x302   :  { %2365 = vrsqrt.f32 %v945_v44  ;;  %v946_v22 = vadd.f32 1e-05, %v930_v46 }
 0x303   :  { %1020 = vperm.xlu1 %2168, %v990_v19  }
 0x304   :  { %v2362_v49 = vpop.eup %2361  ;;  %2367 = vrsqrt.f32 %v946_v22 }
 0x305   :  { %v901_v51 = vpop.xlane.xlu1 %900  ;;  %v991_v52 = vmul.f32 %v2362_v49, %v975_v47  ;;  %v983_v47 = vld [vmem:[%s3401_s4 + $0x60] sm:$0xff] }
 0x306   :  { %v2364_v54 = vpop.eup %2363  ;;  %v931_v55 = vmul.f32 0.020408163, %v901_v51 }
 0x307   :  { %1025 = vperm.xlu0 %2167, %v991_v52   ;;  %v904_v17 = vpop.xlane.xlu0 %903  ;;  %v992_v57 = vmul.f32 %v2364_v54, %v976_v6  ;;  %v984_v6 = vld [vmem:[%s3401_s4 + $0x68] sm:$0xff] }
 0x308   :  { %v947_v20 = vadd.f32 1e-05, %v931_v55  ;;  %v932_v60 = vmul.f32 0.020408163, %v904_v17  ;;  %v985_v55 = vld [vmem:[%s3401_s4 + $0x70] sm:$0xff] }
 0x309   :  { %1030 = vperm.xlu1 %2168, %v992_v57   ;;  %v986_v57 = vld [vmem:[%s3401_s4 + $0x78] sm:$0xff] }
 0x30a   :  { %2369 = vrsqrt.f32 %v947_v20  ;;  %v948_v62 = vadd.f32 1e-05, %v932_v60 }
 0x30c   :  { %v2366_v1 = vpop.eup %2365  ;;  %2371 = vrsqrt.f32 %v948_v62 }
 0x30d   :  { %v907_v4 = vpop.xlane.xlu1 %906  ;;  %v993_v31 = vmul.f32 %v2366_v1, %v977_v63  ;;  %v1113_v63 = vld [vmem:[%s3400_s5 + $0x70] sm:$0xff]  ;;  %v1114_v1 = vld [vmem:[%s3400_s5 + $0x78] sm:$0xff] }
 0x30e   :  { %v2368_v34 = vpop.eup %2367  ;;  %v933_v8 = vmul.f32 0.020408163, %v907_v4 }
 0x30f   :  { %1035 = vperm.xlu0 %2167, %v993_v31   ;;  %v910_v9 = vpop.xlane.xlu0 %909  ;;  %v994_v10 = vmul.f32 %v2368_v34, %v978_v2  ;;  %v2193_v2 = vld [vmem:[%s3402_s6 + $0x40] sm:$0xff]  }
 0x310   :  { %v949_v11 = vadd.f32 1e-05, %v933_v8  ;;  %v934_v12 = vmul.f32 0.020408163, %v910_v9  ;;  %2101 = vmatprep.mubr.bf16.mxu1 %v2193_v2 }
 0x311   :  { %1040 = vperm.xlu1 %2168, %v994_v10  }
 0x312   :  { %2373 = vrsqrt.f32 %v949_v11  ;;  %v950_v14 = vadd.f32 1e-05, %v934_v12 }
 0x314   :  { %v2370_v48 = vpop.eup %2369  ;;  %2375 = vrsqrt.f32 %v950_v14 }
 0x315   :  { %v913_v23 = vpop.xlane.xlu1 %912  ;;  %v995_v24 = vmul.f32 %v2370_v48, %v979_v45 }
 0x316   :  { %v2372_v25 = vpop.eup %2371  ;;  %v935_v26 = vmul.f32 0.020408163, %v913_v23 }
 0x317   :  { %1045 = vperm.xlu0 %2167, %v995_v24   ;;  %v916_v28 = vpop.xlane.xlu0 %915  ;;  %v996_v61 = vmul.f32 %v2372_v25, %v980_v21 }
 0x318   :  { %v951_v0 = vadd.f32 1e-05, %v935_v26  ;;  %v936_v33 = vmul.f32 0.020408163, %v916_v28 }
 0x319   :  { %1050 = vperm.xlu1 %2168, %v996_v61  }
 0x31a   :  { %2377 = vrsqrt.f32 %v951_v0  ;;  %v952_v35 = vadd.f32 1e-05, %v936_v33  ;;  %v1211_v33 = vld [vmem:[%s3403_s2] sm:$0xff] }
 0x31c   :  { %v2374_v37 = vpop.eup %2373  ;;  %2379 = vrsqrt.f32 %v952_v35  ;;  %v1212_v35 = vld [vmem:[%s3403_s2 + $0x8] sm:$0xff] }
 0x31d   :  { %v919_v56 = vpop.xlane.xlu1 %918  ;;  %v997_v13 = vmul.f32 %v2374_v37, %v981_v36 }
 0x31e   :  { %v2376_v16 = vpop.eup %2375  ;;  %v937_v42 = vmul.f32 0.020408163, %v919_v56 }
 0x31f   :  { %1055 = vperm.xlu0 %2167, %v997_v13   ;;  %v922_v43 = vpop.xlane.xlu0 %921  ;;  %v998_v44 = vmul.f32 %v2376_v16, %v982_v38 }
 0x320   :  { %v953_v46 = vadd.f32 1e-05, %v937_v42  ;;  %v938_v19 = vmul.f32 0.020408163, %v922_v43 }
 0x321   :  { %1060 = vperm.xlu1 %2168, %v998_v44   ;;  %v1118_v4 = vpop.permute.xlu1 %1117  ;;  %v1213_v44 = vld [vmem:[%s3403_s2 + $0x10] sm:$0xff] }
 0x322   :  { %2381 = vrsqrt.f32 %v953_v46  ;;  %v954_v22 = vadd.f32 1e-05, %v938_v19  ;;  %v1214_v46 = vld [vmem:[%s3403_s2 + $0x18] sm:$0xff] }
 0x324   :  { %v2378_v49 = vpop.eup %2377  ;;  %2383 = vrsqrt.f32 %v954_v22 }
 0x325   :  { %v999_v51 = vmul.f32 %v2378_v49, %v983_v47  ;;  %v1123_v31 = vpop.permute.xlu1 %1122 }
 0x326   :  { %v2380_v52 = vpop.eup %2379 }
 0x327   :  { %1065 = vperm.xlu0 %2167, %v999_v51   ;;  %v1000_v54 = vmul.f32 %v2380_v52, %v984_v6  ;;  %v1128_v8 = vpop.permute.xlu0 %1127 }
 0x329   :  { %1070 = vperm.xlu1 %2168, %v1000_v54   ;;  %v1133_v34 = vpop.permute.xlu1 %1132 }
 0x32b   :  { %v1138_v10 = vpop.permute.xlu0 %1137 }
 0x32c   :  { %v2382_v17 = vpop.eup %2381 }
 0x32d   :  { %v1001_v20 = vmul.f32 %v2382_v17, %v985_v55  ;;  %v1143_v9 = vpop.permute.xlu1 %1142  ;;  %v1215_v55 = vld [vmem:[%s3403_s2 + $0x20] sm:$0xff]  ;;  %v1216_v17 = vld [vmem:[%s3403_s2 + $0x28] sm:$0xff] }
 0x32e   :  { %v2384_v60 = vpop.eup %2383 }
 0x32f   :  { %1075 = vperm.xlu0 %2167, %v1001_v20   ;;  %v1002_v62 = vmul.f32 %v2384_v60, %v986_v57  ;;  %v1148_v12 = vpop.permute.xlu0 %1147 }
 0x331   :  { %1080 = vperm.xlu1 %2168, %v1002_v62   ;;  %v1153_v11 = vpop.permute.xlu1 %1152 }
 0x333   :  { %1187 = vperm.xlu0 %2167, %v1113_v63   ;;  %v2960_v45 = vpop.permute.xlu0 %1157 }
 0x335   :  { %1192 = vperm.xlu1 %2168, %v1114_v1   ;;  %v2958_v14 = vpop.permute.xlu1 %1162 }
 0x337   :  { %v2964_v21 = vpop.permute.xlu0 %1167 }
 0x339   :  { %v2962_v48 = vpop.permute.xlu1 %1172 }
 0x33b   :  { %v2968_v24 = vpop.permute.xlu0 %1177 }
 0x33d   :  { %v2966_v23 = vpop.permute.xlu1 %1182 }
 0x376   :  { %v1006_v25 = vpop.permute.xlu1 %1005 }
 0x377   :  { %v1083_v26 = vmul.f32 %v1006_v25, %v2764_v27  ;;  %v2209_v27 = vld [vmem:[%s3402_s6] sm:$0xff]  }
 0x378   :  { %v1011_v28 = vpop.permute.xlu0 %1010  ;;  %2085 = vmatprep.mubr.bf16.mxu0 %v2209_v27 }
 0x379   :  { %v1195_v61 = vadd.f32 %v1118_v4, %v1083_v26  ;;  %v1084_v0 = vmul.f32 %v1011_v28, %v2767_v29  ;;  %v1217_v4 = vld [vmem:[%s3403_s2 + $0x30] sm:$0xff] }
 0x37b   :  { %v1196_v36 = vadd.f32 %v1123_v31, %v1084_v0  ;;  %v1227_v37 = vadd.f32 %v1211_v33, %v1195_v61  ;;  %v1218_v31 = vld [vmem:[%s3403_s2 + $0x38] sm:$0xff]  ;;  %v1220_v0 = vld [vmem:[%s3403_s2 + $0x48] sm:$0xff] }
 0x37d   :  { %v1228_v38 = vadd.f32 %v1212_v35, %v1196_v36 }
 0x37e   :  { %v1016_v56 = vpop.permute.xlu0 %1015 }
 0x37f   :  { %v1243_v13 = vpack.c.bf16 %v1228_v38, %v1227_v37  ;;  %v1085_v16 = vmul.f32 %v1016_v56, %v2776_v53 }
 0x381   :  { %1251 = vst.msk [vmem:[#allocation3] sm:$0xff] %vm35_vm0, %v1243_v13  ;;  %v1197_v42 = vadd.f32 %v1128_v8, %v1085_v16  ;;  %v1222_v16 = vld [vmem:[%s3403_s2 + $0x58] sm:$0xff] }
 0x382   :  { %v1021_v29 = vpop.permute.xlu1 %1020 }
 0x383   :  { %v1086_v43 = vmul.f32 %v1021_v29, %v2781_v40  ;;  %v1229_v22 = vadd.f32 %v1213_v44, %v1197_v42 }
 0x385   :  { %v1198_v53 = vadd.f32 %v1133_v34, %v1086_v43 }
 0x386   :  { %v1026_v19 = vpop.permute.xlu0 %1025 }
 0x387   :  { %v1230_v47 = vadd.f32 %v1214_v46, %v1198_v53  ;;  %v1087_v49 = vmul.f32 %v1026_v19, %v2787_v3  ;;  %v1224_v19 = vld [vmem:[%s3403_s2 + $0x68] sm:$0xff] }
 0x388   :  { %v1031_v6 = vpop.permute.xlu1 %1030  ;;  %v1327_v51 = vld [vmem:[#allocation3] sm:$0xff] }
 0x389   :  { %v1244_v52 = vpack.c.bf16 %v1230_v47, %v1229_v22  ;;  %v1199_v54 = vadd.f32 %v1138_v10, %v1087_v49  ;;  %v1088_v40 = vmul.f32 %v1031_v6, %v2791_v50  ;;  %2069 = vmatprep.subr.bf16.mxu0 %v1327_v51  ;;  %2149 = vmatprep.subr.bf16.mxu1 %v1327_v51 }
 0x38a   :  { %2070 = vmatpush3.bf16.msra.mxu0 %v1327_v51  ;;  %2157 = vmatpush3.bf16.msra.mxu1 %v1327_v51 }
 0x38b   :  { %1252 = vst.msk [vmem:[#allocation3 + $0x8] sm:$0xff] %vm35_vm0, %v1244_v52  ;;  %v1200_v3 = vadd.f32 %v1143_v9, %v1088_v40  ;;  %v1231_v57 = vadd.f32 %v1215_v55, %v1199_v54  ;;  %v1226_v55 = vld [vmem:[%s3403_s2 + $0x78] sm:$0xff] }
 0x38d   :  { %v1232_v20 = vadd.f32 %v1216_v17, %v1200_v3 }
 0x38e   :  { %v1036_v60 = vpop.permute.xlu0 %1035 }
 0x38f   :  { %v1245_v62 = vpack.c.bf16 %v1232_v20, %v1231_v57  ;;  %v1089_v50 = vmul.f32 %v1036_v60, %v2800_v58 }
 0x390   :  { %v1041_v63 = vpop.permute.xlu1 %1040 }
 0x391   :  { %1253 = vst.msk [vmem:[#allocation3 + $0x10] sm:$0xff] %vm35_vm0, %v1245_v62  ;;  %v1201_v1 = vadd.f32 %v1148_v12, %v1089_v50  ;;  %v1090_v2 = vmul.f32 %v1041_v63, %v2803_v59  ;;  %v2194_v62 = vld [vmem:[%s3402_s6 + $0x48] sm:$0xff]   ;;  %v2195_v63 = vld [vmem:[%s3402_s6 + $0x50] sm:$0xff]  }
 0x392   :  { %v1328_v34 = vld [vmem:[#allocation3 + $0x8] sm:$0xff] }
 0x393   :  { %v1202_v8 = vadd.f32 %v1153_v11, %v1090_v2  ;;  %2071 = vmatprep.subr.bf16.mxu0 %v1328_v34  ;;  %2150 = vmatprep.subr.bf16.mxu1 %v1328_v34  ;;  %v1233_v58 = vadd.f32 %v1217_v4, %v1201_v1  ;;  %v1219_v11 = vld [vmem:[%s3403_s2 + $0x40] sm:$0xff]  ;;  %v2210_v50 = vld [vmem:[%s3402_s6 + $0x8] sm:$0xff]   ;;  %v2213_v1 = vld [vmem:[%s3402_s6 + $0x10] sm:$0xff]  }
 0x394   :  { %2072 = vmatpush3.bf16.msra.mxu0 %v1328_v34  ;;  %2158 = vmatpush3.bf16.msra.mxu1 %v1328_v34  ;;  %v2196_v2 = vld [vmem:[%s3402_s6 + $0x58] sm:$0xff]   ;;  %v2217_v34 = vld [vmem:[%s3402_s6 + $0x20] sm:$0xff]  }
 0x395   :  { %v1234_v9 = vadd.f32 %v1218_v31, %v1202_v8  ;;  %v2214_v4 = vld [vmem:[%s3402_s6 + $0x18] sm:$0xff]   ;;  %v2197_v31 = vld [vmem:[%s3402_s6 + $0x60] sm:$0xff]   ;;  %v2198_v8 = vld [vmem:[%s3402_s6 + $0x68] sm:$0xff]  }
 0x396   :  { %v1046_v10 = vpop.permute.xlu0 %1045 }
 0x397   :  { %v1246_v12 = vpack.c.bf16 %v1234_v9, %v1233_v58  ;;  %v1091_v59 = vmul.f32 %v1046_v10, %v2812_v5  ;;  %v2218_v58 = vld [vmem:[%s3402_s6 + $0x28] sm:$0xff]   ;;  %v2199_v9 = vld [vmem:[%s3402_s6 + $0x70] sm:$0xff]  }
 0x398   :  { %v1051_v25 = vpop.permute.xlu1 %1050  ;;  %v1329_v26 = vld [vmem:[#allocation3 + $0x10] sm:$0xff] }
 0x399   :  { %1254 = vst.msk [vmem:[#allocation3 + $0x18] sm:$0xff] %vm35_vm0, %v1246_v12  ;;  %v1203_v28 = vadd.f32 %v2960_v45, %v1091_v59  ;;  %v1092_v61 = vmul.f32 %v1051_v25, %v2815_v7  ;;  %2073 = vmatprep.subr.bf16.mxu0 %v1329_v26  ;;  %2151 = vmatprep.subr.bf16.mxu1 %v1329_v26  ;;  %v2221_v10 = vld [vmem:[%s3402_s6 + $0x30] sm:$0xff]   ;;  %v2200_v12 = vld [vmem:[%s3402_s6 + $0x78] sm:$0xff]   ;;  %v2201_v25 = vld [vmem:[%s3402_s6 + $0x80] sm:$0xff]  }
 0x39a   :  { %2074 = vmatpush3.bf16.msra.mxu0 %v1329_v26  ;;  %2159 = vmatpush3.bf16.msra.mxu1 %v1329_v26  ;;  %v2222_v59 = vld [vmem:[%s3402_s6 + $0x38] sm:$0xff]   ;;  %v2202_v26 = vld [vmem:[%s3402_s6 + $0x88] sm:$0xff]  }
 0x39b   :  { %v1204_v5 = vadd.f32 %v2958_v14, %v1092_v61  ;;  %v1235_v33 = vadd.f32 %v1219_v11, %v1203_v28  ;;  %v1221_v14 = vld [vmem:[%s3403_s2 + $0x50] sm:$0xff]  ;;  %v2204_v61 = vld [vmem:[%s3402_s6 + $0x98] sm:$0xff]   ;;  %v2205_v11 = vld [vmem:[%s3402_s6 + $0xa0] sm:$0xff]  }
 0x39c   :  { %v2203_v28 = vld [vmem:[%s3402_s6 + $0x90] sm:$0xff]  }
 0x39d   :  { %v1236_v35 = vadd.f32 %v1220_v0, %v1204_v5  ;;  %v2206_v0 = vld [vmem:[%s3402_s6 + $0xa8] sm:$0xff]   ;;  %v2207_v5 = vld [vmem:[%s3402_s6 + $0xb0] sm:$0xff]  }
 0x39e   :  { %v1056_v36 = vpop.permute.xlu0 %1055 }
 0x39f   :  { %v1247_v45 = vpack.c.bf16 %v1236_v35, %v1235_v33  ;;  %v1093_v7 = vmul.f32 %v1056_v36, %v2824_v15  ;;  %v2208_v33 = vld [vmem:[%s3402_s6 + $0xb8] sm:$0xff]   ;;  %v2211_v35 = vld [vmem:[%s3402_s6 + $0xc0] sm:$0xff]   ;;  %v2212_v36 = vld [vmem:[%s3402_s6 + $0xc8] sm:$0xff]  }
 0x3a0   :  { %v1061_v37 = vpop.permute.xlu1 %1060  ;;  %v1330_v38 = vld [vmem:[#allocation3 + $0x18] sm:$0xff] }
 0x3a1   :  { %1255 = vst.msk [vmem:[#allocation3 + $0x20] sm:$0xff] %vm35_vm0, %v1247_v45  ;;  %v1205_v56 = vadd.f32 %v2964_v21, %v1093_v7  ;;  %v1094_v13 = vmul.f32 %v1061_v37, %v2827_v18  ;;  %2075 = vmatprep.subr.bf16.mxu0 %v1330_v38  ;;  %2152 = vmatprep.subr.bf16.mxu1 %v1330_v38  ;;  %v2215_v45 = vld [vmem:[%s3402_s6 + $0xd0] sm:$0xff]   ;;  %v2216_v7 = vld [vmem:[%s3402_s6 + $0xd8] sm:$0xff]   ;;  %v2219_v37 = vld [vmem:[%s3402_s6 + $0xe0] sm:$0xff]  }
 0x3a2   :  { %2076 = vmatpush3.bf16.msra.mxu0 %v1330_v38  ;;  %2160 = vmatpush3.bf16.msra.mxu1 %v1330_v38  ;;  %v2220_v38 = vld [vmem:[%s3402_s6 + $0xe8] sm:$0xff]  }
 0x3a3   :  { %v1206_v15 = vadd.f32 %v2962_v48, %v1094_v13  ;;  %v1237_v27 = vadd.f32 %v1221_v14, %v1205_v56  ;;  %v1223_v48 = vld [vmem:[%s3403_s2 + $0x60] sm:$0xff]  ;;  %v2223_v56 = vld [vmem:[%s3402_s6 + $0xf0] sm:$0xff]   ;;  %v2224_v13 = vld [vmem:[%s3402_s6 + $0xf8] sm:$0xff]  }
 0x3a5   :  { %v1238_v29 = vadd.f32 %v1222_v16, %v1206_v15 }
 0x3a6   :  { %v1066_v42 = vpop.permute.xlu0 %1065 }
 0x3a7   :  { %v1248_v21 = vpack.c.bf16 %v1238_v29, %v1237_v27  ;;  %v1095_v18 = vmul.f32 %v1066_v42, %v2836_v30 }
 0x3a8   :  { %v1071_v43 = vpop.permute.xlu1 %1070  ;;  %v1331_v44 = vld [vmem:[#allocation3 + $0x20] sm:$0xff] }
 0x3a9   :  { %1256 = vst.msk [vmem:[#allocation3 + $0x28] sm:$0xff] %vm35_vm0, %v1248_v21  ;;  %v1207_v46 = vadd.f32 %v2968_v24, %v1095_v18  ;;  %v1096_v53 = vmul.f32 %v1071_v43, %v2839_v32  ;;  %2077 = vmatprep.subr.bf16.mxu0 %v1331_v44  ;;  %2153 = vmatprep.subr.bf16.mxu1 %v1331_v44 }
 0x3aa   :  { %2078 = vmatpush3.bf16.msra.mxu0 %v1331_v44  ;;  %2161 = vmatpush3.bf16.msra.mxu1 %v1331_v44 }
 0x3ab   :  { %v1208_v30 = vadd.f32 %v2966_v23, %v1096_v53  ;;  %v1239_v22 = vadd.f32 %v1223_v48, %v1207_v46  ;;  %v1225_v23 = vld [vmem:[%s3403_s2 + $0x70] sm:$0xff] }
 0x3ad   :  { %v1240_v47 = vadd.f32 %v1224_v19, %v1208_v30 }
 0x3ae   :  { %v1076_v49 = vpop.permute.xlu0 %1075 }
 0x3af   :  { %v1249_v24 = vpack.c.bf16 %v1240_v47, %v1239_v22  ;;  %v1097_v51 = vmul.f32 %v1076_v49, %v2848_v39 }
 0x3b0   :  { %v1081_v6 = vpop.permute.xlu1 %1080  ;;  %v1332_v32 = vld [vmem:[#allocation3 + $0x28] sm:$0xff] }
 0x3b1   :  { %1257 = vst.msk [vmem:[#allocation3 + $0x30] sm:$0xff] %vm35_vm0, %v1249_v24  ;;  %2079 = vmatprep.subr.bf16.mxu0 %v1332_v32  ;;  %2154 = vmatprep.subr.bf16.mxu1 %v1332_v32  ;;  %v1098_v54 = vmul.f32 %v1081_v6, %v2851_v41 }
 0x3b2   :  { %2080 = vmatpush3.bf16.msra.mxu0 %v1332_v32  ;;  %2162 = vmatpush3.bf16.msra.mxu1 %v1332_v32  ;;  %v1188_v52 = vpop.permute.xlu0 %1187 }
 0x3b3   :  { %v1209_v40 = vadd.f32 %v1188_v52, %v1097_v51 }
 0x3b4   :  { %v1193_v17 = vpop.permute.xlu1 %1192 }
 0x3b5   :  { %v1210_v3 = vadd.f32 %v1193_v17, %v1098_v54  ;;  %v1241_v57 = vadd.f32 %v1225_v23, %v1209_v40 }
 0x3b7   :  { %v1242_v39 = vadd.f32 %v1226_v55, %v1210_v3 }
 0x3b8   :  { %v1333_v20 = vld [vmem:[#allocation3 + $0x30] sm:$0xff] }
 0x3b9   :  { %v1250_v60 = vpack.c.bf16 %v1242_v39, %v1241_v57  ;;  %2081 = vmatprep.subr.bf16.mxu0 %v1333_v20  ;;  %2155 = vmatprep.subr.bf16.mxu1 %v1333_v20 }
 0x3ba   :  { %2082 = vmatpush3.bf16.msra.mxu0 %v1333_v20  ;;  %2163 = vmatpush3.bf16.msra.mxu1 %v1333_v20 }
 0x3bb   :  { %1258 = vst.msk [vmem:[#allocation3 + $0x38] sm:$0xff] %vm35_vm0, %v1250_v60 }
 0x3c2   :  { %v1334_v41 = vld [vmem:[#allocation3 + $0x38] sm:$0xff] }
 0x3c3   :  { %2083 = vmatprep.subr.bf16.mxu0 %v1334_v41  ;;  %2156 = vmatprep.subr.bf16.mxu1 %v1334_v41 }
 0x3c4   :  { %2084 = vmatpush3.bf16.msra.mxu0 %v1334_v41  ;;  %2164 = vmatpush3.bf16.msra.mxu1 %v1334_v41 }
 0x3c7   :  { %2102 = vmatmul.mubr.bf16.vlgmr.msra.gmra.mrb[0].mxu1 %v2194_v62  ;;  %2086 = vmatmul.mubr.bf16.vlgmr.msra.gmra.mrb[32].mxu0 %v2210_v50 }
 0x3c8   :  { %2105 = vmatprep.mubr.bf16.mxu1 %v2195_v63  ;;  %2089 = vmatprep.mubr.bf16.mxu0 %v2213_v1 }
 0x3cf   :  { %2106 = vmatmul.mubr.bf16.gmra.mrb[4].mxu1 %v2196_v2  ;;  %2090 = vmatmul.mubr.bf16.gmra.mrb[36].mxu0 %v2214_v4 }
 0x3d0   :  { %2109 = vmatprep.mubr.bf16.mxu1 %v2197_v31  ;;  %2093 = vmatprep.mubr.bf16.mxu0 %v2217_v34 }
 0x3d7   :  { %2110 = vmatmul.mubr.bf16.gmra.mrb[8].mxu1 %v2198_v8  ;;  %2094 = vmatmul.mubr.bf16.gmra.mrb[40].mxu0 %v2218_v58 }
 0x3d8   :  { %2113 = vmatprep.mubr.bf16.mxu1 %v2199_v9  ;;  %2097 = vmatprep.mubr.bf16.mxu0 %v2221_v10 }
 0x3df   :  { %2114 = vmatmul.mubr.bf16.gmra.mrb[12].mxu1 %v2200_v12  ;;  %2098 = vmatmul.mubr.bf16.gmra.mrb[44].mxu0 %v2222_v59 }
 0x3e0   :  { %2117 = vmatprep.mubr.bf16.mxu1 %v2201_v25 }
 0x3e7   :  { %2118 = vmatmul.mubr.bf16.gmra.mrb[16].mxu1 %v2202_v26 }
 0x3e8   :  { %2121 = vmatprep.mubr.bf16.mxu1 %v2203_v28 }
 0x3ef   :  { %2122 = vmatmul.mubr.bf16.gmra.mrb[20].mxu1 %v2204_v61 }
 0x3f0   :  { %2125 = vmatprep.mubr.bf16.mxu1 %v2205_v11 }
 0x3f7   :  { %2126 = vmatmul.mubr.bf16.gmra.mrb[24].mxu1 %v2206_v0 }
 0x3f8   :  { %2129 = vmatprep.mubr.bf16.mxu1 %v2207_v5 }
 0x3ff   :  { %2130 = vmatmul.mubr.bf16.gmra.mrb[28].mxu1 %v2208_v33 }
 0x400   :  { %2133 = vmatprep.mubr.bf16.mxu1 %v2211_v35 }
 0x407   :  { %2134 = vmatmul.mubr.bf16.gmra.mrb[32].mxu1 %v2212_v36 }
 0x408   :  { %2137 = vmatprep.mubr.bf16.mxu1 %v2215_v45 }
 0x40f   :  { %2138 = vmatmul.mubr.bf16.gmra.mrb[36].mxu1 %v2216_v7 }
 0x410   :  { %2141 = vmatprep.mubr.bf16.mxu1 %v2219_v37 }
 0x417   :  { %2142 = vmatmul.mubr.bf16.gmra.mrb[40].mxu1 %v2220_v38 }
 0x418   :  { %2145 = vmatprep.mubr.bf16.mxu1 %v2223_v56 }
 0x41f   :  { %2146 = vmatmul.mubr.bf16.gmra.mrb[44].mxu1 %v2224_v13 }
 0x49a   :  { %v2103_v14 = vpop.f32.mrb[0].mxu1  ;;  %v2087_v16 = vpop.f32.mrb[32].mxu0 }
 0x49b   :  { %1835 = vst.msk [vmem:[%s3404_s7 + $0x90] sm:$0xff] %vm35_vm0, %v2103_v14  ;;  %v1625_v15 = vpop.f32.mrb[1].mxu1  ;;  %1819 = vst.msk [vmem:[%s3404_s7 + $0x10] sm:$0xff] %vm35_vm0, %v2087_v16  ;;  %v1561_v27 = vpop.f32.mrb[33].mxu0 }
 0x49c   :  { %1833 = vst.msk [vmem:[%s3404_s7 + $0x80] sm:$0xff] %vm35_vm0, %v1625_v15  ;;  %v2104_v29 = vpop.f32.mrb[2].mxu1  ;;  %1817 = vst.msk [vmem:[%s3404_s7] sm:$0xff] %vm35_vm0, %v1561_v27  ;;  %v2088_v42 = vpop.f32.mrb[34].mxu0 }
 0x49d   :  { %1836 = vst.msk [vmem:[%s3404_s7 + $0x98] sm:$0xff] %vm35_vm0, %v2104_v29  ;;  %v1628_v21 = vpop.f32.mrb[3].mxu1  ;;  %1820 = vst.msk [vmem:[%s3404_s7 + $0x18] sm:$0xff] %vm35_vm0, %v2088_v42  ;;  %v1564_v18 = vpop.f32.mrb[35].mxu0 }
 0x49e   :  { %1834 = vst.msk [vmem:[%s3404_s7 + $0x88] sm:$0xff] %vm35_vm0, %v1628_v21  ;;  %1818 = vst.msk [vmem:[%s3404_s7 + $0x8] sm:$0xff] %vm35_vm0, %v1564_v18 }
 0x4a2   :  { %v2107_v43 = vpop.f32.mrb[4].mxu1  ;;  %v2091_v44 = vpop.f32.mrb[36].mxu0 }
 0x4a3   :  { %1839 = vst.msk [vmem:[%s3404_s7 + $0xb0] sm:$0xff] %vm35_vm0, %v2107_v43  ;;  %v1641_v46 = vpop.f32.mrb[5].mxu1  ;;  %1823 = vst.msk [vmem:[%s3404_s7 + $0x30] sm:$0xff] %vm35_vm0, %v2091_v44  ;;  %v1577_v53 = vpop.f32.mrb[37].mxu0 }
 0x4a4   :  { %1837 = vst.msk [vmem:[%s3404_s7 + $0xa0] sm:$0xff] %vm35_vm0, %v1641_v46  ;;  %v2108_v48 = vpop.f32.mrb[6].mxu1  ;;  %1821 = vst.msk [vmem:[%s3404_s7 + $0x20] sm:$0xff] %vm35_vm0, %v1577_v53  ;;  %v2092_v19 = vpop.f32.mrb[38].mxu0 }
 0x4a5   :  { %1840 = vst.msk [vmem:[%s3404_s7 + $0xb8] sm:$0xff] %vm35_vm0, %v2108_v48  ;;  %v1644_v30 = vpop.f32.mrb[7].mxu1  ;;  %1824 = vst.msk [vmem:[%s3404_s7 + $0x38] sm:$0xff] %vm35_vm0, %v2092_v19  ;;  %v1580_v22 = vpop.f32.mrb[39].mxu0 }
 0x4a6   :  { %1838 = vst.msk [vmem:[%s3404_s7 + $0xa8] sm:$0xff] %vm35_vm0, %v1644_v30  ;;  %1822 = vst.msk [vmem:[%s3404_s7 + $0x28] sm:$0xff] %vm35_vm0, %v1580_v22 }
 0x4aa   :  { %v2111_v47 = vpop.f32.mrb[8].mxu1  ;;  %v2095_v49 = vpop.f32.mrb[40].mxu0 }
 0x4ab   :  { %1843 = vst.msk [vmem:[%s3404_s7 + $0xd0] sm:$0xff] %vm35_vm0, %v2111_v47  ;;  %v1657_v24 = vpop.f32.mrb[9].mxu1  ;;  %1827 = vst.msk [vmem:[%s3404_s7 + $0x50] sm:$0xff] %vm35_vm0, %v2095_v49  ;;  %v1593_v6 = vpop.f32.mrb[41].mxu0 }
 0x4ac   :  { %1841 = vst.msk [vmem:[%s3404_s7 + $0xc0] sm:$0xff] %vm35_vm0, %v1657_v24  ;;  %v2112_v32 = vpop.f32.mrb[10].mxu1  ;;  %1825 = vst.msk [vmem:[%s3404_s7 + $0x40] sm:$0xff] %vm35_vm0, %v1593_v6  ;;  %v2096_v51 = vpop.f32.mrb[42].mxu0 }
 0x4ad   :  { %1844 = vst.msk [vmem:[%s3404_s7 + $0xd8] sm:$0xff] %vm35_vm0, %v2112_v32  ;;  %v1660_v52 = vpop.f32.mrb[11].mxu1  ;;  %1828 = vst.msk [vmem:[%s3404_s7 + $0x58] sm:$0xff] %vm35_vm0, %v2096_v51  ;;  %v1596_v54 = vpop.f32.mrb[43].mxu0 }
 0x4ae   :  { %1842 = vst.msk [vmem:[%s3404_s7 + $0xc8] sm:$0xff] %vm35_vm0, %v1660_v52  ;;  %1826 = vst.msk [vmem:[%s3404_s7 + $0x48] sm:$0xff] %vm35_vm0, %v1596_v54 }
 0x4b2   :  { %v2115_v40 = vpop.f32.mrb[12].mxu1  ;;  %v2099_v23 = vpop.f32.mrb[44].mxu0 }
 0x4b3   :  { %1847 = vst.msk [vmem:[%s3404_s7 + $0xf0] sm:$0xff] %vm35_vm0, %v2115_v40  ;;  %v1673_v55 = vpop.f32.mrb[13].mxu1  ;;  %1831 = vst.msk [vmem:[%s3404_s7 + $0x70] sm:$0xff] %vm35_vm0, %v2099_v23  ;;  %v1609_v17 = vpop.f32.mrb[45].mxu0 }
 0x4b4   :  { %1845 = vst.msk [vmem:[%s3404_s7 + $0xe0] sm:$0xff] %vm35_vm0, %v1673_v55  ;;  %v2116_v3 = vpop.f32.mrb[14].mxu1  ;;  %1829 = vst.msk [vmem:[%s3404_s7 + $0x60] sm:$0xff] %vm35_vm0, %v1609_v17  ;;  %v2100_v57 = vpop.f32.mrb[46].mxu0 }
 0x4b5   :  { %1848 = vst.msk [vmem:[%s3404_s7 + $0xf8] sm:$0xff] %vm35_vm0, %v2116_v3  ;;  %v1676_v39 = vpop.f32.mrb[15].mxu1  ;;  %1832 = vst.msk [vmem:[%s3404_s7 + $0x78] sm:$0xff] %vm35_vm0, %v2100_v57  ;;  %v1612_v20 = vpop.f32.mrb[47].mxu0 }
 0x4b6   :  { %1846 = vst.msk [vmem:[%s3404_s7 + $0xe8] sm:$0xff] %vm35_vm0, %v1676_v39  ;;  %1830 = vst.msk [vmem:[%s3404_s7 + $0x68] sm:$0xff] %vm35_vm0, %v1612_v20 }
 0x4ba   :  { %v2119_v60 = vpop.f32.mrb[16].mxu1 }
 0x4bb   :  { %1851 = vst.msk [vmem:[%s3404_s7 + $0x110] sm:$0xff] %vm35_vm0, %v2119_v60  ;;  %v1689_v41 = vpop.f32.mrb[17].mxu1 }
 0x4bc   :  { %1849 = vst.msk [vmem:[%s3404_s7 + $0x100] sm:$0xff] %vm35_vm0, %v1689_v41  ;;  %v2120_v62 = vpop.f32.mrb[18].mxu1 }
 0x4bd   :  { %1852 = vst.msk [vmem:[%s3404_s7 + $0x118] sm:$0xff] %vm35_vm0, %v2120_v62  ;;  %v1692_v50 = vpop.f32.mrb[19].mxu1 }
 0x4be   :  { %1850 = vst.msk [vmem:[%s3404_s7 + $0x108] sm:$0xff] %vm35_vm0, %v1692_v50 }
 0x4c2   :  { %v2123_v63 = vpop.f32.mrb[20].mxu1 }
 0x4c3   :  { %1855 = vst.msk [vmem:[%s3404_s7 + $0x130] sm:$0xff] %vm35_vm0, %v2123_v63  ;;  %v1705_v1 = vpop.f32.mrb[21].mxu1 }
 0x4c4   :  { %1853 = vst.msk [vmem:[%s3404_s7 + $0x120] sm:$0xff] %vm35_vm0, %v1705_v1  ;;  %v2124_v2 = vpop.f32.mrb[22].mxu1 }
 0x4c5   :  { %1856 = vst.msk [vmem:[%s3404_s7 + $0x138] sm:$0xff] %vm35_vm0, %v2124_v2  ;;  %v1708_v4 = vpop.f32.mrb[23].mxu1 }
 0x4c6   :  { %1854 = vst.msk [vmem:[%s3404_s7 + $0x128] sm:$0xff] %vm35_vm0, %v1708_v4 }
 0x4ca   :  { %v2127_v31 = vpop.f32.mrb[24].mxu1 }
 0x4cb   :  { %1859 = vst.msk [vmem:[%s3404_s7 + $0x150] sm:$0xff] %vm35_vm0, %v2127_v31  ;;  %v1721_v34 = vpop.f32.mrb[25].mxu1 }
 0x4cc   :  { %1857 = vst.msk [vmem:[%s3404_s7 + $0x140] sm:$0xff] %vm35_vm0, %v1721_v34  ;;  %v2128_v8 = vpop.f32.mrb[26].mxu1 }
 0x4cd   :  { %1860 = vst.msk [vmem:[%s3404_s7 + $0x158] sm:$0xff] %vm35_vm0, %v2128_v8  ;;  %v1724_v58 = vpop.f32.mrb[27].mxu1 }
 0x4ce   :  { %1858 = vst.msk [vmem:[%s3404_s7 + $0x148] sm:$0xff] %vm35_vm0, %v1724_v58 }
 0x4d2   :  { %v2131_v9 = vpop.f32.mrb[28].mxu1 }
 0x4d3   :  { %1863 = vst.msk [vmem:[%s3404_s7 + $0x170] sm:$0xff] %vm35_vm0, %v2131_v9  ;;  %v1737_v10 = vpop.f32.mrb[29].mxu1 }
 0x4d4   :  { %1861 = vst.msk [vmem:[%s3404_s7 + $0x160] sm:$0xff] %vm35_vm0, %v1737_v10  ;;  %v2132_v12 = vpop.f32.mrb[30].mxu1 }
 0x4d5   :  { %1864 = vst.msk [vmem:[%s3404_s7 + $0x178] sm:$0xff] %vm35_vm0, %v2132_v12  ;;  %v1740_v59 = vpop.f32.mrb[31].mxu1 }
 0x4d6   :  { %1862 = vst.msk [vmem:[%s3404_s7 + $0x168] sm:$0xff] %vm35_vm0, %v1740_v59 }
 0x4da   :  { %v2135_v25 = vpop.f32.mrb[32].mxu1 }
 0x4db   :  { %1867 = vst.msk [vmem:[%s3404_s7 + $0x190] sm:$0xff] %vm35_vm0, %v2135_v25  ;;  %v1753_v26 = vpop.f32.mrb[33].mxu1 }
 0x4dc   :  { %1865 = vst.msk [vmem:[%s3404_s7 + $0x180] sm:$0xff] %vm35_vm0, %v1753_v26  ;;  %v2136_v28 = vpop.f32.mrb[34].mxu1 }
 0x4dd   :  { %1868 = vst.msk [vmem:[%s3404_s7 + $0x198] sm:$0xff] %vm35_vm0, %v2136_v28  ;;  %v1756_v61 = vpop.f32.mrb[35].mxu1 }
 0x4de   :  { %1866 = vst.msk [vmem:[%s3404_s7 + $0x188] sm:$0xff] %vm35_vm0, %v1756_v61 }
 0x4e2   :  { %v2139_v11 = vpop.f32.mrb[36].mxu1 }
 0x4e3   :  { %1871 = vst.msk [vmem:[%s3404_s7 + $0x1b0] sm:$0xff] %vm35_vm0, %v2139_v11  ;;  %v1769_v0 = vpop.f32.mrb[37].mxu1 }
 0x4e4   :  { %1869 = vst.msk [vmem:[%s3404_s7 + $0x1a0] sm:$0xff] %vm35_vm0, %v1769_v0  ;;  %v2140_v5 = vpop.f32.mrb[38].mxu1 }
 0x4e5   :  { %1872 = vst.msk [vmem:[%s3404_s7 + $0x1b8] sm:$0xff] %vm35_vm0, %v2140_v5  ;;  %v1772_v33 = vpop.f32.mrb[39].mxu1 }
 0x4e6   :  { %1870 = vst.msk [vmem:[%s3404_s7 + $0x1a8] sm:$0xff] %vm35_vm0, %v1772_v33 }
 0x4ea   :  { %v2143_v35 = vpop.f32.mrb[40].mxu1 }
 0x4eb   :  { %1875 = vst.msk [vmem:[%s3404_s7 + $0x1d0] sm:$0xff] %vm35_vm0, %v2143_v35  ;;  %v1785_v36 = vpop.f32.mrb[41].mxu1 }
 0x4ec   :  { %1873 = vst.msk [vmem:[%s3404_s7 + $0x1c0] sm:$0xff] %vm35_vm0, %v1785_v36  ;;  %v2144_v45 = vpop.f32.mrb[42].mxu1 }
 0x4ed   :  { %1876 = vst.msk [vmem:[%s3404_s7 + $0x1d8] sm:$0xff] %vm35_vm0, %v2144_v45  ;;  %v1788_v7 = vpop.f32.mrb[43].mxu1 }
 0x4ee   :  { %1874 = vst.msk [vmem:[%s3404_s7 + $0x1c8] sm:$0xff] %vm35_vm0, %v1788_v7 }
 0x4f2   :  { %v2147_v37 = vpop.f32.mrb[44].mxu1 }
 0x4f3   :  { %1879 = vst.msk [vmem:[%s3404_s7 + $0x1f0] sm:$0xff] %vm35_vm0, %v2147_v37  ;;  %v1801_v38 = vpop.f32.mrb[45].mxu1 }
 0x4f4   :  { %1877 = vst.msk [vmem:[%s3404_s7 + $0x1e0] sm:$0xff] %vm35_vm0, %v1801_v38  ;;  %v2148_v56 = vpop.f32.mrb[46].mxu1 }
 0x4f5   :  { %1880 = vst.msk [vmem:[%s3404_s7 + $0x1f8] sm:$0xff] %vm35_vm0, %v2148_v56  ;;  %v1804_v13 = vpop.f32.mrb[47].mxu1 }
 0x4f6   :  { %1878 = vst.msk [vmem:[%s3404_s7 + $0x1e8] sm:$0xff] %vm35_vm0, %v1804_v13 }

</bundles_post_ra>
